<compile_context>
chip_gen: v7x
topology: tpu7x:2x2x1
jax: 0.10.0
libtpu: 0.0.40
codegen_flags: <defaults>
</compile_context>

<pallas_src>
import functools

import jax
import jax.numpy as jnp
from jax.experimental import pallas as pl
from jax.experimental.pallas import tpu as pltpu

# ---- small config consistent with the module (scaled down) ----
NUM_ITEMS = 10
VOCAB = NUM_ITEMS + 2           # +2: padding token (0) and mask token
VOCAB_PAD = 128                 # lane-dense padded vocab for the final store
HIDDEN = 32
MAX_LEN = 8
N_LAYERS = 2
N_HEADS = 2
FF_DIM = HIDDEN * 4
HEAD_DIM = HIDDEN // N_HEADS
LN_EPS = 1e-5


def _gelu_tanh(x):
    # tanh-approx GELU: tanh lowers to the EUP slot instead of a ~10-op VALU
    # erf polynomial (important on v5e, which has the least VALU headroom).
    c = 0.7978845608028654  # sqrt(2/pi)
    return 0.5 * x * (1.0 + jnp.tanh(c * (x + 0.044715 * x * x * x)))


def bert4rec_kernel(x_ref,
                    wqkv_ref, bqkv_ref, wo_ref, bo_ref,
                    ln1_g_ref, ln1_b_ref,
                    ff1_w_ref, ff1_b_ref, ff2_w_ref, ff2_b_ref,
                    ln2_g_ref, ln2_b_ref, lin_w_ref, lin_b_ref,
                    o_ref, *, tb, seq, hidden, n_heads, n_layers):
    """One grid step = TB batch elements' full encoder stack + projection."""
    m = tb * seq
    hd = hidden // n_heads

    def layer_norm(v, g, b):
        mu = jnp.mean(v, axis=-1, keepdims=True)
        var = jnp.mean(jnp.square(v - mu), axis=-1, keepdims=True)
        return (v - mu) * jax.lax.rsqrt(var + LN_EPS) * g + b

    # Fold the batch block into the matmul M dimension: (TB, S, H) -> (TB*S, H).
    x = x_ref[...].reshape(m, hidden).astype(jnp.float32)

    # TODO(synk): switch to lax.fori_loop + pl.ds-indexed weight refs if
    # n_layers grows beyond ~4 (static unroll stops bounding vreg live ranges).
    for l in range(n_layers):
        # ---- multi-head self-attention (post-LN, PyTorch default) ----
        # Fused lane-dense QKV projection: ONE (m, H) @ (H, 3H) matmul.
        # Column layout: [Q(h0..h_{nh-1}) | K(...) | V(...)], each head hd wide.
        # 1/sqrt(head_dim) is already folded into the Q columns at init time.
        qkv = jnp.dot(x.astype(jnp.bfloat16), wqkv_ref[l],
                      preferred_element_type=jnp.float32) + bqkv_ref[l]

        ctx_heads = []
        # TODO(synk): at larger head counts, replace this static per-head slice
        # loop with a (TB*nh)-batched einsum or a head grid axis.
        for h in range(n_heads):
            qh = qkv[:, h * hd:(h + 1) * hd]
            kh = qkv[:, hidden + h * hd:hidden + (h + 1) * hd]
            vh = qkv[:, 2 * hidden + h * hd:2 * hidden + (h + 1) * hd]
            qh = qh.reshape(tb, seq, hd).astype(jnp.bfloat16)
            kh = kh.reshape(tb, seq, hd).astype(jnp.bfloat16)
            vh = vh.reshape(tb, seq, hd).astype(jnp.bfloat16)

            s = jnp.einsum('bqd,bkd->bqk', qh, kh,
                           preferred_element_type=jnp.float32)      # (TB, S, S)
            s = s - jnp.max(s, axis=-1, keepdims=True)
            p = jnp.exp(s)
            p = p * pl.reciprocal(jnp.sum(p, axis=-1, keepdims=True),
                                  approx=True)
            ctx = jnp.einsum('bqk,bkd->bqd', p.astype(jnp.bfloat16), vh,
                             preferred_element_type=jnp.float32)    # (TB, S, hd)
            ctx_heads.append(ctx.reshape(m, hd))

        # Concat-heads output projection: ONE (m, H) @ (H, H) matmul (no
        # per-head matmul + cross-array reduction).
        ctx2d = jnp.concatenate(ctx_heads, axis=-1).astype(jnp.bfloat16)
        attn = jnp.dot(ctx2d, wo_ref[l],
                       preferred_element_type=jnp.float32) + bo_ref[l]
        x = layer_norm(x + attn, ln1_g_ref[l], ln1_b_ref[l])

        # ---- feed-forward ----
        h1 = jnp.dot(x.astype(jnp.bfloat16), ff1_w_ref[l],
                     preferred_element_type=jnp.float32) + ff1_b_ref[l]
        h1 = _gelu_tanh(h1)
        h2 = jnp.dot(h1.astype(jnp.bfloat16), ff2_w_ref[l],
                     preferred_element_type=jnp.float32) + ff2_b_ref[l]
        x = layer_norm(x + h2, ln2_g_ref[l], ln2_b_ref[l])

    # ---- final vocab projection, lane-dense (vocab padded to 128 columns) ----
    logits = jnp.dot(x.astype(jnp.bfloat16), lin_w_ref[...],
                     preferred_element_type=jnp.float32) + lin_b_ref[...]
    o_ref[...] = logits.reshape(tb, seq, VOCAB_PAD)


def init_params(key):
    keys = jax.random.split(key, 12)

    def normal(k, shape, scale=0.05):
        return (scale * jax.random.normal(k, shape)).astype(jnp.float32)

    bf = lambda a: a.astype(jnp.bfloat16)

    item_emb = normal(keys[0], (VOCAB, HIDDEN), 1.0)
    item_emb = item_emb.at[0].set(0.0)              # padding_idx=0 -> zero row
    pos_emb = normal(keys[1], (MAX_LEN, HIDDEN), 1.0)

    # Fused QKV weight, columns [Q | K | V]; fold 1/sqrt(head_dim) into Q.
    wqkv = normal(keys[2], (N_LAYERS, HIDDEN, 3 * HIDDEN))
    bqkv = normal(keys[3], (N_LAYERS, 1, 3 * HIDDEN))
    scale = 1.0 / (HEAD_DIM ** 0.5)
    wqkv = wqkv.at[:, :, :HIDDEN].multiply(scale)
    bqkv = bqkv.at[:, :, :HIDDEN].multiply(scale)

    # Zero-padded lane-dense final projection (vocab 12 -> 128 columns).
    lin_w = jnp.zeros((HIDDEN, VOCAB_PAD), jnp.float32)
    lin_w = lin_w.at[:, :VOCAB].set(normal(keys[8], (HIDDEN, VOCAB)))
    lin_b = jnp.zeros((1, VOCAB_PAD), jnp.float32)
    lin_b = lin_b.at[:, :VOCAB].set(normal(keys[9], (1, VOCAB)))

    return dict(
        item_emb=item_emb,
        pos_emb=pos_emb,
        wqkv=bf(wqkv), bqkv=bqkv,
        wo=bf(normal(keys[4], (N_LAYERS, HIDDEN, HIDDEN))),
        bo=normal(keys[5], (N_LAYERS, 1, HIDDEN)),
        ln1_g=jnp.ones((N_LAYERS, 1, HIDDEN), jnp.float32),
        ln1_b=jnp.zeros((N_LAYERS, 1, HIDDEN), jnp.float32),
        ff1_w=bf(normal(keys[6], (N_LAYERS, HIDDEN, FF_DIM))),
        ff1_b=normal(keys[7], (N_LAYERS, 1, FF_DIM)),
        ff2_w=bf(normal(keys[10], (N_LAYERS, FF_DIM, HIDDEN))),
        ff2_b=normal(keys[11], (N_LAYERS, 1, HIDDEN)),
        ln2_g=jnp.ones((N_LAYERS, 1, HIDDEN), jnp.float32),
        ln2_b=jnp.zeros((N_LAYERS, 1, HIDDEN), jnp.float32),
        lin_w=bf(lin_w),
        lin_b=lin_b,
    )


WEIGHT_NAMES = ('wqkv', 'bqkv', 'wo', 'bo', 'ln1_g', 'ln1_b',
                'ff1_w', 'ff1_b', 'ff2_w', 'ff2_b',
                'ln2_g', 'ln2_b', 'lin_w', 'lin_b')


def _num_tensorcores_per_chip():
    # v5e / v6e expose a single TensorCore per chip; v7x (and v3/v4/v5p class
    # devices) have two.  Default to 2 (keeps >= 2 parallel steps — safe).
    try:
        kind = jax.devices()[0].device_kind.lower()
    except Exception:
        return 2
    if 'lite' in kind or 'v5e' in kind or 'v6' in kind:
        return 1
    return 2


def _choose_batch_block(batch, seq):
    # Keep >= num_tc grid steps so both v7x TensorCores get work, otherwise
    # make TB*S as large as practical (fills MXU rows, amortizes the ~600-cycle
    # per-grid-step cost on single-TC v5e/v6e).  Cap at ~256 rows per step.
    if batch <= 1:
        return 1
    num_tc = _num_tensorcores_per_chip()
    min_steps = min(batch, max(1, num_tc))
    tb = max(1, batch // min_steps)
    target_rows = max(1, -(-256 // seq))     # ceil(256 / seq)
    tb = min(tb, target_rows)
    while batch % tb:                        # keep the grid exact (no padding)
        tb -= 1
    return max(tb, 1)


@jax.jit
def bert4rec_forward(input_seq, params):
    B, S = input_seq.shape
    # Embedding lookups (gather) stay plain-JAX glue; emit the activation slab
    # in bf16 to halve the input DMA bytes.
    # TODO(synk): at production sizes, fold the gather into the kernel via
    # PrefetchScalarGridSpec + pl.Element row gather to skip one HBM round trip.
    positions = jnp.arange(S)
    x = (params['item_emb'][input_seq]
         + params['pos_emb'][positions][None, :, :]).astype(jnp.bfloat16)

    tb = _choose_batch_block(B, S)
    weights = tuple(params[n] for n in WEIGHT_NAMES)

    def full_spec(a):
        nd = a.ndim
        # Constant index_map -> the weight block stays resident across grid
        # steps (no per-step re-DMA).  At production sizes, also mark these
        # single-buffered (pipeline_mode=pl.Buffered(1)) to free VMEM on v7x.
        return pl.BlockSpec(a.shape, lambda b, _nd=nd: (0,) * _nd)

    kernel = functools.partial(bert4rec_kernel, tb=tb, seq=S, hidden=HIDDEN,
                               n_heads=N_HEADS, n_layers=N_LAYERS)

    logits_pad = pl.pallas_call(
        kernel,
        out_shape=jax.ShapeDtypeStruct((B, S, VOCAB_PAD), jnp.float32),
        grid=(B // tb,),
        in_specs=[pl.BlockSpec((tb, S, HIDDEN), lambda b: (b, 0, 0))]
                 + [full_spec(w) for w in weights],
        out_specs=pl.BlockSpec((tb, S, VOCAB_PAD), lambda b: (b, 0, 0)),
        compiler_params=pltpu.CompilerParams(
            dimension_semantics=("parallel",)),
    )(x, *weights)

    return logits_pad[:, :, :VOCAB]


if __name__ == "__main__":
    key = jax.random.PRNGKey(0)
    pkey, dkey = jax.random.split(key)
    params = init_params(pkey)
    # token ids in [1, num_items+1]; 0 is padding, num_items+1 is the mask token
    input_seq = jax.random.randint(dkey, (2, MAX_LEN), 1, NUM_ITEMS + 2,
                                   dtype=jnp.int32)

    logits = bert4rec_forward(input_seq, params)
    jax.block_until_ready(logits)
    assert logits.shape == (2, MAX_LEN, VOCAB)
    assert bool(jnp.all(jnp.isfinite(logits)))
    print("KERNEL_OK")
</pallas_src>

<mosaic_0001>
module attributes {stable_mosaic.version = 11 : i64} {
  func.func @bert4rec_kernel(%arg0: i32, %arg1: memref<1x8x32xbf16, #tpu.memory_space<vmem>>, %arg2: memref<2x32x96xbf16, #tpu.memory_space<vmem>>, %arg3: memref<2x1x96xf32, #tpu.memory_space<vmem>>, %arg4: memref<2x32x32xbf16, #tpu.memory_space<vmem>>, %arg5: memref<2x1x32xf32, #tpu.memory_space<vmem>>, %arg6: memref<2x1x32xf32, #tpu.memory_space<vmem>>, %arg7: memref<2x1x32xf32, #tpu.memory_space<vmem>>, %arg8: memref<2x32x128xbf16, #tpu.memory_space<vmem>>, %arg9: memref<2x1x128xf32, #tpu.memory_space<vmem>>, %arg10: memref<2x128x32xbf16, #tpu.memory_space<vmem>>, %arg11: memref<2x1x32xf32, #tpu.memory_space<vmem>>, %arg12: memref<2x1x32xf32, #tpu.memory_space<vmem>>, %arg13: memref<2x1x32xf32, #tpu.memory_space<vmem>>, %arg14: memref<32x128xbf16, #tpu.memory_space<vmem>>, %arg15: memref<1x128xf32, #tpu.memory_space<vmem>>, %arg16: memref<1x8x128xf32, #tpu.memory_space<vmem>>) attributes {dimension_semantics = [#tpu.dimension_semantics<parallel>], iteration_bounds = array<i64: 2>, scalar_prefetch = 0 : i64, scratch_operands = 0 : i64, tpu.core_type = #tpu.core_type<tc>, window_params = [{transform_indices = @transform_0, window_bounds = array<i64: 1, 8, 32>}, {pipeline_mode = #tpu.pipeline_mode<synchronous>, transform_indices = @transform_1, window_bounds = array<i64: 2, 32, 96>}, {pipeline_mode = #tpu.pipeline_mode<synchronous>, transform_indices = @transform_2, window_bounds = array<i64: 2, 1, 96>}, {pipeline_mode = #tpu.pipeline_mode<synchronous>, transform_indices = @transform_3, window_bounds = array<i64: 2, 32, 32>}, {pipeline_mode = #tpu.pipeline_mode<synchronous>, transform_indices = @transform_4, window_bounds = array<i64: 2, 1, 32>}, {pipeline_mode = #tpu.pipeline_mode<synchronous>, transform_indices = @transform_5, window_bounds = array<i64: 2, 1, 32>}, {pipeline_mode = #tpu.pipeline_mode<synchronous>, transform_indices = @transform_6, window_bounds = array<i64: 2, 1, 32>}, {pipeline_mode = #tpu.pipeline_mode<synchronous>, transform_indices = @transform_7, window_bounds = array<i64: 2, 32, 128>}, {pipeline_mode = #tpu.pipeline_mode<synchronous>, transform_indices = @transform_8, window_bounds = array<i64: 2, 1, 128>}, {pipeline_mode = #tpu.pipeline_mode<synchronous>, transform_indices = @transform_9, window_bounds = array<i64: 2, 128, 32>}, {pipeline_mode = #tpu.pipeline_mode<synchronous>, transform_indices = @transform_10, window_bounds = array<i64: 2, 1, 32>}, {pipeline_mode = #tpu.pipeline_mode<synchronous>, transform_indices = @transform_11, window_bounds = array<i64: 2, 1, 32>}, {pipeline_mode = #tpu.pipeline_mode<synchronous>, transform_indices = @transform_12, window_bounds = array<i64: 2, 1, 32>}, {pipeline_mode = #tpu.pipeline_mode<synchronous>, transform_indices = @transform_13, window_bounds = array<i64: 32, 128>}, {pipeline_mode = #tpu.pipeline_mode<synchronous>, transform_indices = @transform_14, window_bounds = array<i64: 1, 128>}, {transform_indices = @transform_15, window_bounds = array<i64: 1, 8, 128>}]} {
    %c0 = arith.constant 0 : index
    %c0_0 = arith.constant 0 : index
    %c0_1 = arith.constant 0 : index
    %0 = vector.load %arg1[%c0, %c0_0, %c0_1] : memref<1x8x32xbf16, #tpu.memory_space<vmem>>, vector<1x8x32xbf16>
    %1 = vector.shape_cast %0 : vector<1x8x32xbf16> to vector<8x32xbf16>
    %2 = arith.extf %1 : vector<8x32xbf16> to vector<8x32xf32>
    %3 = arith.truncf %2 : vector<8x32xf32> to vector<8x32xbf16>
    %c0_2 = arith.constant 0 : index
    %c0_3 = arith.constant 0 : index
    %c0_4 = arith.constant 0 : index
    %4 = vector.load %arg2[%c0_2, %c0_3, %c0_4] : memref<2x32x96xbf16, #tpu.memory_space<vmem>>, vector<1x32x96xbf16>
    %5 = vector.shape_cast %4 : vector<1x32x96xbf16> to vector<32x96xbf16>
    %cst = arith.constant dense<0.000000e+00> : vector<8x96xf32>
    %6 = tpu.matmul %3, %5, %cst {dimension_numbers = #tpu.dot_dimension_numbers<[1], [0], [0], [1], [0, 0, 1, 1], [], []>} : vector<8x32xbf16>, vector<32x96xbf16>, vector<8x96xf32> -> vector<8x96xf32>
    %c0_5 = arith.constant 0 : index
    %c0_6 = arith.constant 0 : index
    %c0_7 = arith.constant 0 : index
    %7 = vector.load %arg3[%c0_5, %c0_6, %c0_7] : memref<2x1x96xf32, #tpu.memory_space<vmem>>, vector<1x1x96xf32>
    %8 = vector.shape_cast %7 : vector<1x1x96xf32> to vector<1x96xf32>
    %9 = vector.broadcast %8 : vector<1x96xf32> to vector<8x96xf32>
    %10 = arith.addf %6, %9 : vector<8x96xf32>
    %11 = vector.extract_strided_slice %10 {offsets = [0, 0], sizes = [8, 16], strides = [1, 1]} : vector<8x96xf32> to vector<8x16xf32>
    %12 = vector.extract_strided_slice %10 {offsets = [0, 32], sizes = [8, 16], strides = [1, 1]} : vector<8x96xf32> to vector<8x16xf32>
    %13 = vector.extract_strided_slice %10 {offsets = [0, 64], sizes = [8, 16], strides = [1, 1]} : vector<8x96xf32> to vector<8x16xf32>
    %14 = vector.shape_cast %11 : vector<8x16xf32> to vector<1x8x16xf32>
    %15 = arith.truncf %14 : vector<1x8x16xf32> to vector<1x8x16xbf16>
    %16 = vector.shape_cast %12 : vector<8x16xf32> to vector<1x8x16xf32>
    %17 = arith.truncf %16 : vector<1x8x16xf32> to vector<1x8x16xbf16>
    %18 = vector.shape_cast %13 : vector<8x16xf32> to vector<1x8x16xf32>
    %19 = arith.truncf %18 : vector<1x8x16xf32> to vector<1x8x16xbf16>
    "tpu.trace_start"() <{level = 10 : i32, message = "bqd,bkd->bqk"}> : () -> ()
    %cst_8 = arith.constant dense<0.000000e+00> : vector<1x8x8xf32>
    %20 = tpu.matmul %15, %17, %cst_8 {dimension_numbers = #tpu.dot_dimension_numbers<[2], [2], [1], [1], [0, 0, 0, 1, 1, 1], [0], [0]>} : vector<1x8x16xbf16>, vector<1x8x16xbf16>, vector<1x8x8xf32> -> vector<1x8x8xf32>
    "tpu.trace_stop"() : () -> ()
    %cst_9 = arith.constant dense<0xFF800000> : vector<1x8xf32>
    %21 = vector.multi_reduction <maximumf>, %20, %cst_9 [2] : vector<1x8x8xf32> to vector<1x8xf32>
    %22 = vector.shape_cast %21 : vector<1x8xf32> to vector<1x8x1xf32>
    %23 = vector.broadcast %22 : vector<1x8x1xf32> to vector<1x8x8xf32>
    %24 = arith.subf %20, %23 : vector<1x8x8xf32>
    %25 = math.exp %24 : vector<1x8x8xf32>
    %cst_10 = arith.constant dense<0.000000e+00> : vector<1x8xf32>
    %26 = vector.multi_reduction <add>, %25, %cst_10 [2] : vector<1x8x8xf32> to vector<1x8xf32>
    %27 = vector.shape_cast %26 : vector<1x8xf32> to vector<1x8x1xf32>
    %28 = tpu.reciprocal %27 {approx = true} : vector<1x8x1xf32> -> vector<1x8x1xf32>
    %29 = vector.broadcast %28 : vector<1x8x1xf32> to vector<1x8x8xf32>
    %30 = arith.mulf %25, %29 : vector<1x8x8xf32>
    %31 = arith.truncf %30 : vector<1x8x8xf32> to vector<1x8x8xbf16>
    "tpu.trace_start"() <{level = 10 : i32, message = "bqk,bkd->bqd"}> : () -> ()
    %cst_11 = arith.constant dense<0.000000e+00> : vector<1x8x16xf32>
    %32 = tpu.matmul %31, %19, %cst_11 {dimension_numbers = #tpu.dot_dimension_numbers<[2], [1], [1], [2], [0, 0, 0, 1, 1, 2], [0], [0]>} : vector<1x8x8xbf16>, vector<1x8x16xbf16>, vector<1x8x16xf32> -> vector<1x8x16xf32>
    "tpu.trace_stop"() : () -> ()
    %33 = vector.shape_cast %32 : vector<1x8x16xf32> to vector<8x16xf32>
    %34 = vector.extract_strided_slice %10 {offsets = [0, 16], sizes = [8, 16], strides = [1, 1]} : vector<8x96xf32> to vector<8x16xf32>
    %35 = vector.extract_strided_slice %10 {offsets = [0, 48], sizes = [8, 16], strides = [1, 1]} : vector<8x96xf32> to vector<8x16xf32>
    %36 = vector.extract_strided_slice %10 {offsets = [0, 80], sizes = [8, 16], strides = [1, 1]} : vector<8x96xf32> to vector<8x16xf32>
    %37 = vector.shape_cast %34 : vector<8x16xf32> to vector<1x8x16xf32>
    %38 = arith.truncf %37 : vector<1x8x16xf32> to vector<1x8x16xbf16>
    %39 = vector.shape_cast %35 : vector<8x16xf32> to vector<1x8x16xf32>
    %40 = arith.truncf %39 : vector<1x8x16xf32> to vector<1x8x16xbf16>
    %41 = vector.shape_cast %36 : vector<8x16xf32> to vector<1x8x16xf32>
    %42 = arith.truncf %41 : vector<1x8x16xf32> to vector<1x8x16xbf16>
    "tpu.trace_start"() <{level = 10 : i32, message = "bqd,bkd->bqk"}> : () -> ()
    %cst_12 = arith.constant dense<0.000000e+00> : vector<1x8x8xf32>
    %43 = tpu.matmul %38, %40, %cst_12 {dimension_numbers = #tpu.dot_dimension_numbers<[2], [2], [1], [1], [0, 0, 0, 1, 1, 1], [0], [0]>} : vector<1x8x16xbf16>, vector<1x8x16xbf16>, vector<1x8x8xf32> -> vector<1x8x8xf32>
    "tpu.trace_stop"() : () -> ()
    %cst_13 = arith.constant dense<0xFF800000> : vector<1x8xf32>
    %44 = vector.multi_reduction <maximumf>, %43, %cst_13 [2] : vector<1x8x8xf32> to vector<1x8xf32>
    %45 = vector.shape_cast %44 : vector<1x8xf32> to vector<1x8x1xf32>
    %46 = vector.broadcast %45 : vector<1x8x1xf32> to vector<1x8x8xf32>
    %47 = arith.subf %43, %46 : vector<1x8x8xf32>
    %48 = math.exp %47 : vector<1x8x8xf32>
    %cst_14 = arith.constant dense<0.000000e+00> : vector<1x8xf32>
    %49 = vector.multi_reduction <add>, %48, %cst_14 [2] : vector<1x8x8xf32> to vector<1x8xf32>
    %50 = vector.shape_cast %49 : vector<1x8xf32> to vector<1x8x1xf32>
    %51 = tpu.reciprocal %50 {approx = true} : vector<1x8x1xf32> -> vector<1x8x1xf32>
    %52 = vector.broadcast %51 : vector<1x8x1xf32> to vector<1x8x8xf32>
    %53 = arith.mulf %48, %52 : vector<1x8x8xf32>
    %54 = arith.truncf %53 : vector<1x8x8xf32> to vector<1x8x8xbf16>
    "tpu.trace_start"() <{level = 10 : i32, message = "bqk,bkd->bqd"}> : () -> ()
    %cst_15 = arith.constant dense<0.000000e+00> : vector<1x8x16xf32>
    %55 = tpu.matmul %54, %42, %cst_15 {dimension_numbers = #tpu.dot_dimension_numbers<[2], [1], [1], [2], [0, 0, 0, 1, 1, 2], [0], [0]>} : vector<1x8x8xbf16>, vector<1x8x16xbf16>, vector<1x8x16xf32> -> vector<1x8x16xf32>
    "tpu.trace_stop"() : () -> ()
    %56 = vector.shape_cast %55 : vector<1x8x16xf32> to vector<8x16xf32>
    %57 = tpu.concatenate %33, %56 in 1 : vector<8x16xf32>, vector<8x16xf32> -> vector<8x32xf32>
    %58 = arith.truncf %57 : vector<8x32xf32> to vector<8x32xbf16>
    %c0_16 = arith.constant 0 : index
    %c0_17 = arith.constant 0 : index
    %c0_18 = arith.constant 0 : index
    %59 = vector.load %arg4[%c0_16, %c0_17, %c0_18] : memref<2x32x32xbf16, #tpu.memory_space<vmem>>, vector<1x32x32xbf16>
    %60 = vector.shape_cast %59 : vector<1x32x32xbf16> to vector<32x32xbf16>
    %cst_19 = arith.constant dense<0.000000e+00> : vector<8x32xf32>
    %61 = tpu.matmul %58, %60, %cst_19 {dimension_numbers = #tpu.dot_dimension_numbers<[1], [0], [0], [1], [0, 0, 1, 1], [], []>} : vector<8x32xbf16>, vector<32x32xbf16>, vector<8x32xf32> -> vector<8x32xf32>
    %c0_20 = arith.constant 0 : index
    %c0_21 = arith.constant 0 : index
    %c0_22 = arith.constant 0 : index
    %62 = vector.load %arg5[%c0_20, %c0_21, %c0_22] : memref<2x1x32xf32, #tpu.memory_space<vmem>>, vector<1x1x32xf32>
    %63 = vector.shape_cast %62 : vector<1x1x32xf32> to vector<1x32xf32>
    %64 = vector.broadcast %63 : vector<1x32xf32> to vector<8x32xf32>
    %65 = arith.addf %61, %64 : vector<8x32xf32>
    %66 = arith.addf %2, %65 : vector<8x32xf32>
    %c0_23 = arith.constant 0 : index
    %c0_24 = arith.constant 0 : index
    %c0_25 = arith.constant 0 : index
    %67 = vector.load %arg6[%c0_23, %c0_24, %c0_25] : memref<2x1x32xf32, #tpu.memory_space<vmem>>, vector<1x1x32xf32>
    %68 = vector.shape_cast %67 : vector<1x1x32xf32> to vector<1x32xf32>
    %c0_26 = arith.constant 0 : index
    %c0_27 = arith.constant 0 : index
    %c0_28 = arith.constant 0 : index
    %69 = vector.load %arg7[%c0_26, %c0_27, %c0_28] : memref<2x1x32xf32, #tpu.memory_space<vmem>>, vector<1x1x32xf32>
    %70 = vector.shape_cast %69 : vector<1x1x32xf32> to vector<1x32xf32>
    %cst_29 = arith.constant dense<0.000000e+00> : vector<8xf32>
    %71 = vector.multi_reduction <add>, %66, %cst_29 [1] : vector<8x32xf32> to vector<8xf32>
    %72 = vector.shape_cast %71 : vector<8xf32> to vector<8x1xf32>
    %cst_30 = arith.constant 3.200000e+01 : f32
    %73 = vector.broadcast %cst_30 : f32 to vector<8x1xf32>
    %74 = arith.divf %72, %73 : vector<8x1xf32>
    %75 = vector.broadcast %74 : vector<8x1xf32> to vector<8x32xf32>
    %76 = arith.subf %66, %75 : vector<8x32xf32>
    %77 = arith.mulf %76, %76 : vector<8x32xf32>
    %cst_31 = arith.constant dense<0.000000e+00> : vector<8xf32>
    %78 = vector.multi_reduction <add>, %77, %cst_31 [1] : vector<8x32xf32> to vector<8xf32>
    %79 = vector.shape_cast %78 : vector<8xf32> to vector<8x1xf32>
    %cst_32 = arith.constant 3.200000e+01 : f32
    %80 = vector.broadcast %cst_32 : f32 to vector<8x1xf32>
    %81 = arith.divf %79, %80 : vector<8x1xf32>
    %82 = vector.broadcast %74 : vector<8x1xf32> to vector<8x32xf32>
    %83 = arith.subf %66, %82 : vector<8x32xf32>
    %cst_33 = arith.constant 9.99999974E-6 : f32
    %84 = vector.broadcast %cst_33 : f32 to vector<8x1xf32>
    %85 = arith.addf %81, %84 : vector<8x1xf32>
    %86 = math.rsqrt %85 : vector<8x1xf32>
    %87 = vector.broadcast %86 : vector<8x1xf32> to vector<8x32xf32>
    %88 = arith.mulf %83, %87 : vector<8x32xf32>
    %89 = vector.broadcast %68 : vector<1x32xf32> to vector<8x32xf32>
    %90 = arith.mulf %88, %89 : vector<8x32xf32>
    %91 = vector.broadcast %70 : vector<1x32xf32> to vector<8x32xf32>
    %92 = arith.addf %90, %91 : vector<8x32xf32>
    %93 = arith.truncf %92 : vector<8x32xf32> to vector<8x32xbf16>
    %c0_34 = arith.constant 0 : index
    %c0_35 = arith.constant 0 : index
    %c0_36 = arith.constant 0 : index
    %94 = vector.load %arg8[%c0_34, %c0_35, %c0_36] : memref<2x32x128xbf16, #tpu.memory_space<vmem>>, vector<1x32x128xbf16>
    %95 = vector.shape_cast %94 : vector<1x32x128xbf16> to vector<32x128xbf16>
    %cst_37 = arith.constant dense<0.000000e+00> : vector<8x128xf32>
    %96 = tpu.matmul %93, %95, %cst_37 {dimension_numbers = #tpu.dot_dimension_numbers<[1], [0], [0], [1], [0, 0, 1, 1], [], []>} : vector<8x32xbf16>, vector<32x128xbf16>, vector<8x128xf32> -> vector<8x128xf32>
    %c0_38 = arith.constant 0 : index
    %c0_39 = arith.constant 0 : index
    %c0_40 = arith.constant 0 : index
    %97 = vector.load %arg9[%c0_38, %c0_39, %c0_40] : memref<2x1x128xf32, #tpu.memory_space<vmem>>, vector<1x1x128xf32>
    %98 = vector.shape_cast %97 : vector<1x1x128xf32> to vector<1x128xf32>
    %99 = vector.broadcast %98 : vector<1x128xf32> to vector<8x128xf32>
    %100 = arith.addf %96, %99 : vector<8x128xf32>
    %cst_41 = arith.constant 5.000000e-01 : f32
    %101 = vector.broadcast %cst_41 : f32 to vector<8x128xf32>
    %102 = arith.mulf %101, %100 : vector<8x128xf32>
    %cst_42 = arith.constant 4.471500e-02 : f32
    %103 = vector.broadcast %cst_42 : f32 to vector<8x128xf32>
    %104 = arith.mulf %103, %100 : vector<8x128xf32>
    %105 = arith.mulf %104, %100 : vector<8x128xf32>
    %106 = arith.mulf %105, %100 : vector<8x128xf32>
    %107 = arith.addf %100, %106 : vector<8x128xf32>
    %cst_43 = arith.constant 0.797884583 : f32
    %108 = vector.broadcast %cst_43 : f32 to vector<8x128xf32>
    %109 = arith.mulf %108, %107 : vector<8x128xf32>
    %110 = math.tanh %109 : vector<8x128xf32>
    %cst_44 = arith.constant 1.000000e+00 : f32
    %111 = vector.broadcast %cst_44 : f32 to vector<8x128xf32>
    %112 = arith.addf %111, %110 : vector<8x128xf32>
    %113 = arith.mulf %102, %112 : vector<8x128xf32>
    %114 = arith.truncf %113 : vector<8x128xf32> to vector<8x128xbf16>
    %c0_45 = arith.constant 0 : index
    %c0_46 = arith.constant 0 : index
    %c0_47 = arith.constant 0 : index
    %115 = vector.load %arg10[%c0_45, %c0_46, %c0_47] : memref<2x128x32xbf16, #tpu.memory_space<vmem>>, vector<1x128x32xbf16>
    %116 = vector.shape_cast %115 : vector<1x128x32xbf16> to vector<128x32xbf16>
    %cst_48 = arith.constant dense<0.000000e+00> : vector<8x32xf32>
    %117 = tpu.matmul %114, %116, %cst_48 {dimension_numbers = #tpu.dot_dimension_numbers<[1], [0], [0], [1], [0, 0, 1, 1], [], []>} : vector<8x128xbf16>, vector<128x32xbf16>, vector<8x32xf32> -> vector<8x32xf32>
    %c0_49 = arith.constant 0 : index
    %c0_50 = arith.constant 0 : index
    %c0_51 = arith.constant 0 : index
    %118 = vector.load %arg11[%c0_49, %c0_50, %c0_51] : memref<2x1x32xf32, #tpu.memory_space<vmem>>, vector<1x1x32xf32>
    %119 = vector.shape_cast %118 : vector<1x1x32xf32> to vector<1x32xf32>
    %120 = vector.broadcast %119 : vector<1x32xf32> to vector<8x32xf32>
    %121 = arith.addf %117, %120 : vector<8x32xf32>
    %122 = arith.addf %92, %121 : vector<8x32xf32>
    %c0_52 = arith.constant 0 : index
    %c0_53 = arith.constant 0 : index
    %c0_54 = arith.constant 0 : index
    %123 = vector.load %arg12[%c0_52, %c0_53, %c0_54] : memref<2x1x32xf32, #tpu.memory_space<vmem>>, vector<1x1x32xf32>
    %124 = vector.shape_cast %123 : vector<1x1x32xf32> to vector<1x32xf32>
    %c0_55 = arith.constant 0 : index
    %c0_56 = arith.constant 0 : index
    %c0_57 = arith.constant 0 : index
    %125 = vector.load %arg13[%c0_55, %c0_56, %c0_57] : memref<2x1x32xf32, #tpu.memory_space<vmem>>, vector<1x1x32xf32>
    %126 = vector.shape_cast %125 : vector<1x1x32xf32> to vector<1x32xf32>
    %cst_58 = arith.constant dense<0.000000e+00> : vector<8xf32>
    %127 = vector.multi_reduction <add>, %122, %cst_58 [1] : vector<8x32xf32> to vector<8xf32>
    %128 = vector.shape_cast %127 : vector<8xf32> to vector<8x1xf32>
    %cst_59 = arith.constant 3.200000e+01 : f32
    %129 = vector.broadcast %cst_59 : f32 to vector<8x1xf32>
    %130 = arith.divf %128, %129 : vector<8x1xf32>
    %131 = vector.broadcast %130 : vector<8x1xf32> to vector<8x32xf32>
    %132 = arith.subf %122, %131 : vector<8x32xf32>
    %133 = arith.mulf %132, %132 : vector<8x32xf32>
    %cst_60 = arith.constant dense<0.000000e+00> : vector<8xf32>
    %134 = vector.multi_reduction <add>, %133, %cst_60 [1] : vector<8x32xf32> to vector<8xf32>
    %135 = vector.shape_cast %134 : vector<8xf32> to vector<8x1xf32>
    %cst_61 = arith.constant 3.200000e+01 : f32
    %136 = vector.broadcast %cst_61 : f32 to vector<8x1xf32>
    %137 = arith.divf %135, %136 : vector<8x1xf32>
    %138 = vector.broadcast %130 : vector<8x1xf32> to vector<8x32xf32>
    %139 = arith.subf %122, %138 : vector<8x32xf32>
    %cst_62 = arith.constant 9.99999974E-6 : f32
    %140 = vector.broadcast %cst_62 : f32 to vector<8x1xf32>
    %141 = arith.addf %137, %140 : vector<8x1xf32>
    %142 = math.rsqrt %141 : vector<8x1xf32>
    %143 = vector.broadcast %142 : vector<8x1xf32> to vector<8x32xf32>
    %144 = arith.mulf %139, %143 : vector<8x32xf32>
    %145 = vector.broadcast %124 : vector<1x32xf32> to vector<8x32xf32>
    %146 = arith.mulf %144, %145 : vector<8x32xf32>
    %147 = vector.broadcast %126 : vector<1x32xf32> to vector<8x32xf32>
    %148 = arith.addf %146, %147 : vector<8x32xf32>
    %149 = arith.truncf %148 : vector<8x32xf32> to vector<8x32xbf16>
    %c1 = arith.constant 1 : index
    %c0_63 = arith.constant 0 : index
    %c0_64 = arith.constant 0 : index
    %150 = vector.load %arg2[%c1, %c0_63, %c0_64] : memref<2x32x96xbf16, #tpu.memory_space<vmem>>, vector<1x32x96xbf16>
    %151 = vector.shape_cast %150 : vector<1x32x96xbf16> to vector<32x96xbf16>
    %cst_65 = arith.constant dense<0.000000e+00> : vector<8x96xf32>
    %152 = tpu.matmul %149, %151, %cst_65 {dimension_numbers = #tpu.dot_dimension_numbers<[1], [0], [0], [1], [0, 0, 1, 1], [], []>} : vector<8x32xbf16>, vector<32x96xbf16>, vector<8x96xf32> -> vector<8x96xf32>
    %c1_66 = arith.constant 1 : index
    %c0_67 = arith.constant 0 : index
    %c0_68 = arith.constant 0 : index
    %153 = vector.load %arg3[%c1_66, %c0_67, %c0_68] : memref<2x1x96xf32, #tpu.memory_space<vmem>>, vector<1x1x96xf32>
    %154 = vector.shape_cast %153 : vector<1x1x96xf32> to vector<1x96xf32>
    %155 = vector.broadcast %154 : vector<1x96xf32> to vector<8x96xf32>
    %156 = arith.addf %152, %155 : vector<8x96xf32>
    %157 = vector.extract_strided_slice %156 {offsets = [0, 0], sizes = [8, 16], strides = [1, 1]} : vector<8x96xf32> to vector<8x16xf32>
    %158 = vector.extract_strided_slice %156 {offsets = [0, 32], sizes = [8, 16], strides = [1, 1]} : vector<8x96xf32> to vector<8x16xf32>
    %159 = vector.extract_strided_slice %156 {offsets = [0, 64], sizes = [8, 16], strides = [1, 1]} : vector<8x96xf32> to vector<8x16xf32>
    %160 = vector.shape_cast %157 : vector<8x16xf32> to vector<1x8x16xf32>
    %161 = arith.truncf %160 : vector<1x8x16xf32> to vector<1x8x16xbf16>
    %162 = vector.shape_cast %158 : vector<8x16xf32> to vector<1x8x16xf32>
    %163 = arith.truncf %162 : vector<1x8x16xf32> to vector<1x8x16xbf16>
    %164 = vector.shape_cast %159 : vector<8x16xf32> to vector<1x8x16xf32>
    %165 = arith.truncf %164 : vector<1x8x16xf32> to vector<1x8x16xbf16>
    "tpu.trace_start"() <{level = 10 : i32, message = "bqd,bkd->bqk"}> : () -> ()
    %cst_69 = arith.constant dense<0.000000e+00> : vector<1x8x8xf32>
    %166 = tpu.matmul %161, %163, %cst_69 {dimension_numbers = #tpu.dot_dimension_numbers<[2], [2], [1], [1], [0, 0, 0, 1, 1, 1], [0], [0]>} : vector<1x8x16xbf16>, vector<1x8x16xbf16>, vector<1x8x8xf32> -> vector<1x8x8xf32>
    "tpu.trace_stop"() : () -> ()
    %cst_70 = arith.constant dense<0xFF800000> : vector<1x8xf32>
    %167 = vector.multi_reduction <maximumf>, %166, %cst_70 [2] : vector<1x8x8xf32> to vector<1x8xf32>
    %168 = vector.shape_cast %167 : vector<1x8xf32> to vector<1x8x1xf32>
    %169 = vector.broadcast %168 : vector<1x8x1xf32> to vector<1x8x8xf32>
    %170 = arith.subf %166, %169 : vector<1x8x8xf32>
    %171 = math.exp %170 : vector<1x8x8xf32>
    %cst_71 = arith.constant dense<0.000000e+00> : vector<1x8xf32>
    %172 = vector.multi_reduction <add>, %171, %cst_71 [2] : vector<1x8x8xf32> to vector<1x8xf32>
    %173 = vector.shape_cast %172 : vector<1x8xf32> to vector<1x8x1xf32>
    %174 = tpu.reciprocal %173 {approx = true} : vector<1x8x1xf32> -> vector<1x8x1xf32>
    %175 = vector.broadcast %174 : vector<1x8x1xf32> to vector<1x8x8xf32>
    %176 = arith.mulf %171, %175 : vector<1x8x8xf32>
    %177 = arith.truncf %176 : vector<1x8x8xf32> to vector<1x8x8xbf16>
    "tpu.trace_start"() <{level = 10 : i32, message = "bqk,bkd->bqd"}> : () -> ()
    %cst_72 = arith.constant dense<0.000000e+00> : vector<1x8x16xf32>
    %178 = tpu.matmul %177, %165, %cst_72 {dimension_numbers = #tpu.dot_dimension_numbers<[2], [1], [1], [2], [0, 0, 0, 1, 1, 2], [0], [0]>} : vector<1x8x8xbf16>, vector<1x8x16xbf16>, vector<1x8x16xf32> -> vector<1x8x16xf32>
    "tpu.trace_stop"() : () -> ()
    %179 = vector.shape_cast %178 : vector<1x8x16xf32> to vector<8x16xf32>
    %180 = vector.extract_strided_slice %156 {offsets = [0, 16], sizes = [8, 16], strides = [1, 1]} : vector<8x96xf32> to vector<8x16xf32>
    %181 = vector.extract_strided_slice %156 {offsets = [0, 48], sizes = [8, 16], strides = [1, 1]} : vector<8x96xf32> to vector<8x16xf32>
    %182 = vector.extract_strided_slice %156 {offsets = [0, 80], sizes = [8, 16], strides = [1, 1]} : vector<8x96xf32> to vector<8x16xf32>
    %183 = vector.shape_cast %180 : vector<8x16xf32> to vector<1x8x16xf32>
    %184 = arith.truncf %183 : vector<1x8x16xf32> to vector<1x8x16xbf16>
    %185 = vector.shape_cast %181 : vector<8x16xf32> to vector<1x8x16xf32>
    %186 = arith.truncf %185 : vector<1x8x16xf32> to vector<1x8x16xbf16>
    %187 = vector.shape_cast %182 : vector<8x16xf32> to vector<1x8x16xf32>
    %188 = arith.truncf %187 : vector<1x8x16xf32> to vector<1x8x16xbf16>
    "tpu.trace_start"() <{level = 10 : i32, message = "bqd,bkd->bqk"}> : () -> ()
    %cst_73 = arith.constant dense<0.000000e+00> : vector<1x8x8xf32>
    %189 = tpu.matmul %184, %186, %cst_73 {dimension_numbers = #tpu.dot_dimension_numbers<[2], [2], [1], [1], [0, 0, 0, 1, 1, 1], [0], [0]>} : vector<1x8x16xbf16>, vector<1x8x16xbf16>, vector<1x8x8xf32> -> vector<1x8x8xf32>
    "tpu.trace_stop"() : () -> ()
    %cst_74 = arith.constant dense<0xFF800000> : vector<1x8xf32>
    %190 = vector.multi_reduction <maximumf>, %189, %cst_74 [2] : vector<1x8x8xf32> to vector<1x8xf32>
    %191 = vector.shape_cast %190 : vector<1x8xf32> to vector<1x8x1xf32>
    %192 = vector.broadcast %191 : vector<1x8x1xf32> to vector<1x8x8xf32>
    %193 = arith.subf %189, %192 : vector<1x8x8xf32>
    %194 = math.exp %193 : vector<1x8x8xf32>
    %cst_75 = arith.constant dense<0.000000e+00> : vector<1x8xf32>
    %195 = vector.multi_reduction <add>, %194, %cst_75 [2] : vector<1x8x8xf32> to vector<1x8xf32>
    %196 = vector.shape_cast %195 : vector<1x8xf32> to vector<1x8x1xf32>
    %197 = tpu.reciprocal %196 {approx = true} : vector<1x8x1xf32> -> vector<1x8x1xf32>
    %198 = vector.broadcast %197 : vector<1x8x1xf32> to vector<1x8x8xf32>
    %199 = arith.mulf %194, %198 : vector<1x8x8xf32>
    %200 = arith.truncf %199 : vector<1x8x8xf32> to vector<1x8x8xbf16>
    "tpu.trace_start"() <{level = 10 : i32, message = "bqk,bkd->bqd"}> : () -> ()
    %cst_76 = arith.constant dense<0.000000e+00> : vector<1x8x16xf32>
    %201 = tpu.matmul %200, %188, %cst_76 {dimension_numbers = #tpu.dot_dimension_numbers<[2], [1], [1], [2], [0, 0, 0, 1, 1, 2], [0], [0]>} : vector<1x8x8xbf16>, vector<1x8x16xbf16>, vector<1x8x16xf32> -> vector<1x8x16xf32>
    "tpu.trace_stop"() : () -> ()
    %202 = vector.shape_cast %201 : vector<1x8x16xf32> to vector<8x16xf32>
    %203 = tpu.concatenate %179, %202 in 1 : vector<8x16xf32>, vector<8x16xf32> -> vector<8x32xf32>
    %204 = arith.truncf %203 : vector<8x32xf32> to vector<8x32xbf16>
    %c1_77 = arith.constant 1 : index
    %c0_78 = arith.constant 0 : index
    %c0_79 = arith.constant 0 : index
    %205 = vector.load %arg4[%c1_77, %c0_78, %c0_79] : memref<2x32x32xbf16, #tpu.memory_space<vmem>>, vector<1x32x32xbf16>
    %206 = vector.shape_cast %205 : vector<1x32x32xbf16> to vector<32x32xbf16>
    %cst_80 = arith.constant dense<0.000000e+00> : vector<8x32xf32>
    %207 = tpu.matmul %204, %206, %cst_80 {dimension_numbers = #tpu.dot_dimension_numbers<[1], [0], [0], [1], [0, 0, 1, 1], [], []>} : vector<8x32xbf16>, vector<32x32xbf16>, vector<8x32xf32> -> vector<8x32xf32>
    %c1_81 = arith.constant 1 : index
    %c0_82 = arith.constant 0 : index
    %c0_83 = arith.constant 0 : index
    %208 = vector.load %arg5[%c1_81, %c0_82, %c0_83] : memref<2x1x32xf32, #tpu.memory_space<vmem>>, vector<1x1x32xf32>
    %209 = vector.shape_cast %208 : vector<1x1x32xf32> to vector<1x32xf32>
    %210 = vector.broadcast %209 : vector<1x32xf32> to vector<8x32xf32>
    %211 = arith.addf %207, %210 : vector<8x32xf32>
    %212 = arith.addf %148, %211 : vector<8x32xf32>
    %c1_84 = arith.constant 1 : index
    %c0_85 = arith.constant 0 : index
    %c0_86 = arith.constant 0 : index
    %213 = vector.load %arg6[%c1_84, %c0_85, %c0_86] : memref<2x1x32xf32, #tpu.memory_space<vmem>>, vector<1x1x32xf32>
    %214 = vector.shape_cast %213 : vector<1x1x32xf32> to vector<1x32xf32>
    %c1_87 = arith.constant 1 : index
    %c0_88 = arith.constant 0 : index
    %c0_89 = arith.constant 0 : index
    %215 = vector.load %arg7[%c1_87, %c0_88, %c0_89] : memref<2x1x32xf32, #tpu.memory_space<vmem>>, vector<1x1x32xf32>
    %216 = vector.shape_cast %215 : vector<1x1x32xf32> to vector<1x32xf32>
    %cst_90 = arith.constant dense<0.000000e+00> : vector<8xf32>
    %217 = vector.multi_reduction <add>, %212, %cst_90 [1] : vector<8x32xf32> to vector<8xf32>
    %218 = vector.shape_cast %217 : vector<8xf32> to vector<8x1xf32>
    %cst_91 = arith.constant 3.200000e+01 : f32
    %219 = vector.broadcast %cst_91 : f32 to vector<8x1xf32>
    %220 = arith.divf %218, %219 : vector<8x1xf32>
    %221 = vector.broadcast %220 : vector<8x1xf32> to vector<8x32xf32>
    %222 = arith.subf %212, %221 : vector<8x32xf32>
    %223 = arith.mulf %222, %222 : vector<8x32xf32>
    %cst_92 = arith.constant dense<0.000000e+00> : vector<8xf32>
    %224 = vector.multi_reduction <add>, %223, %cst_92 [1] : vector<8x32xf32> to vector<8xf32>
    %225 = vector.shape_cast %224 : vector<8xf32> to vector<8x1xf32>
    %cst_93 = arith.constant 3.200000e+01 : f32
    %226 = vector.broadcast %cst_93 : f32 to vector<8x1xf32>
    %227 = arith.divf %225, %226 : vector<8x1xf32>
    %228 = vector.broadcast %220 : vector<8x1xf32> to vector<8x32xf32>
    %229 = arith.subf %212, %228 : vector<8x32xf32>
    %cst_94 = arith.constant 9.99999974E-6 : f32
    %230 = vector.broadcast %cst_94 : f32 to vector<8x1xf32>
    %231 = arith.addf %227, %230 : vector<8x1xf32>
    %232 = math.rsqrt %231 : vector<8x1xf32>
    %233 = vector.broadcast %232 : vector<8x1xf32> to vector<8x32xf32>
    %234 = arith.mulf %229, %233 : vector<8x32xf32>
    %235 = vector.broadcast %214 : vector<1x32xf32> to vector<8x32xf32>
    %236 = arith.mulf %234, %235 : vector<8x32xf32>
    %237 = vector.broadcast %216 : vector<1x32xf32> to vector<8x32xf32>
    %238 = arith.addf %236, %237 : vector<8x32xf32>
    %239 = arith.truncf %238 : vector<8x32xf32> to vector<8x32xbf16>
    %c1_95 = arith.constant 1 : index
    %c0_96 = arith.constant 0 : index
    %c0_97 = arith.constant 0 : index
    %240 = vector.load %arg8[%c1_95, %c0_96, %c0_97] : memref<2x32x128xbf16, #tpu.memory_space<vmem>>, vector<1x32x128xbf16>
    %241 = vector.shape_cast %240 : vector<1x32x128xbf16> to vector<32x128xbf16>
    %cst_98 = arith.constant dense<0.000000e+00> : vector<8x128xf32>
    %242 = tpu.matmul %239, %241, %cst_98 {dimension_numbers = #tpu.dot_dimension_numbers<[1], [0], [0], [1], [0, 0, 1, 1], [], []>} : vector<8x32xbf16>, vector<32x128xbf16>, vector<8x128xf32> -> vector<8x128xf32>
    %c1_99 = arith.constant 1 : index
    %c0_100 = arith.constant 0 : index
    %c0_101 = arith.constant 0 : index
    %243 = vector.load %arg9[%c1_99, %c0_100, %c0_101] : memref<2x1x128xf32, #tpu.memory_space<vmem>>, vector<1x1x128xf32>
    %244 = vector.shape_cast %243 : vector<1x1x128xf32> to vector<1x128xf32>
    %245 = vector.broadcast %244 : vector<1x128xf32> to vector<8x128xf32>
    %246 = arith.addf %242, %245 : vector<8x128xf32>
    %cst_102 = arith.constant 5.000000e-01 : f32
    %247 = vector.broadcast %cst_102 : f32 to vector<8x128xf32>
    %248 = arith.mulf %247, %246 : vector<8x128xf32>
    %cst_103 = arith.constant 4.471500e-02 : f32
    %249 = vector.broadcast %cst_103 : f32 to vector<8x128xf32>
    %250 = arith.mulf %249, %246 : vector<8x128xf32>
    %251 = arith.mulf %250, %246 : vector<8x128xf32>
    %252 = arith.mulf %251, %246 : vector<8x128xf32>
    %253 = arith.addf %246, %252 : vector<8x128xf32>
    %cst_104 = arith.constant 0.797884583 : f32
    %254 = vector.broadcast %cst_104 : f32 to vector<8x128xf32>
    %255 = arith.mulf %254, %253 : vector<8x128xf32>
    %256 = math.tanh %255 : vector<8x128xf32>
    %cst_105 = arith.constant 1.000000e+00 : f32
    %257 = vector.broadcast %cst_105 : f32 to vector<8x128xf32>
    %258 = arith.addf %257, %256 : vector<8x128xf32>
    %259 = arith.mulf %248, %258 : vector<8x128xf32>
    %260 = arith.truncf %259 : vector<8x128xf32> to vector<8x128xbf16>
    %c1_106 = arith.constant 1 : index
    %c0_107 = arith.constant 0 : index
    %c0_108 = arith.constant 0 : index
    %261 = vector.load %arg10[%c1_106, %c0_107, %c0_108] : memref<2x128x32xbf16, #tpu.memory_space<vmem>>, vector<1x128x32xbf16>
    %262 = vector.shape_cast %261 : vector<1x128x32xbf16> to vector<128x32xbf16>
    %cst_109 = arith.constant dense<0.000000e+00> : vector<8x32xf32>
    %263 = tpu.matmul %260, %262, %cst_109 {dimension_numbers = #tpu.dot_dimension_numbers<[1], [0], [0], [1], [0, 0, 1, 1], [], []>} : vector<8x128xbf16>, vector<128x32xbf16>, vector<8x32xf32> -> vector<8x32xf32>
    %c1_110 = arith.constant 1 : index
    %c0_111 = arith.constant 0 : index
    %c0_112 = arith.constant 0 : index
    %264 = vector.load %arg11[%c1_110, %c0_111, %c0_112] : memref<2x1x32xf32, #tpu.memory_space<vmem>>, vector<1x1x32xf32>
    %265 = vector.shape_cast %264 : vector<1x1x32xf32> to vector<1x32xf32>
    %266 = vector.broadcast %265 : vector<1x32xf32> to vector<8x32xf32>
    %267 = arith.addf %263, %266 : vector<8x32xf32>
    %268 = arith.addf %238, %267 : vector<8x32xf32>
    %c1_113 = arith.constant 1 : index
    %c0_114 = arith.constant 0 : index
    %c0_115 = arith.constant 0 : index
    %269 = vector.load %arg12[%c1_113, %c0_114, %c0_115] : memref<2x1x32xf32, #tpu.memory_space<vmem>>, vector<1x1x32xf32>
    %270 = vector.shape_cast %269 : vector<1x1x32xf32> to vector<1x32xf32>
    %c1_116 = arith.constant 1 : index
    %c0_117 = arith.constant 0 : index
    %c0_118 = arith.constant 0 : index
    %271 = vector.load %arg13[%c1_116, %c0_117, %c0_118] : memref<2x1x32xf32, #tpu.memory_space<vmem>>, vector<1x1x32xf32>
    %272 = vector.shape_cast %271 : vector<1x1x32xf32> to vector<1x32xf32>
    %cst_119 = arith.constant dense<0.000000e+00> : vector<8xf32>
    %273 = vector.multi_reduction <add>, %268, %cst_119 [1] : vector<8x32xf32> to vector<8xf32>
    %274 = vector.shape_cast %273 : vector<8xf32> to vector<8x1xf32>
    %cst_120 = arith.constant 3.200000e+01 : f32
    %275 = vector.broadcast %cst_120 : f32 to vector<8x1xf32>
    %276 = arith.divf %274, %275 : vector<8x1xf32>
    %277 = vector.broadcast %276 : vector<8x1xf32> to vector<8x32xf32>
    %278 = arith.subf %268, %277 : vector<8x32xf32>
    %279 = arith.mulf %278, %278 : vector<8x32xf32>
    %cst_121 = arith.constant dense<0.000000e+00> : vector<8xf32>
    %280 = vector.multi_reduction <add>, %279, %cst_121 [1] : vector<8x32xf32> to vector<8xf32>
    %281 = vector.shape_cast %280 : vector<8xf32> to vector<8x1xf32>
    %cst_122 = arith.constant 3.200000e+01 : f32
    %282 = vector.broadcast %cst_122 : f32 to vector<8x1xf32>
    %283 = arith.divf %281, %282 : vector<8x1xf32>
    %284 = vector.broadcast %276 : vector<8x1xf32> to vector<8x32xf32>
    %285 = arith.subf %268, %284 : vector<8x32xf32>
    %cst_123 = arith.constant 9.99999974E-6 : f32
    %286 = vector.broadcast %cst_123 : f32 to vector<8x1xf32>
    %287 = arith.addf %283, %286 : vector<8x1xf32>
    %288 = math.rsqrt %287 : vector<8x1xf32>
    %289 = vector.broadcast %288 : vector<8x1xf32> to vector<8x32xf32>
    %290 = arith.mulf %285, %289 : vector<8x32xf32>
    %291 = vector.broadcast %270 : vector<1x32xf32> to vector<8x32xf32>
    %292 = arith.mulf %290, %291 : vector<8x32xf32>
    %293 = vector.broadcast %272 : vector<1x32xf32> to vector<8x32xf32>
    %294 = arith.addf %292, %293 : vector<8x32xf32>
    %295 = arith.truncf %294 : vector<8x32xf32> to vector<8x32xbf16>
    %c0_124 = arith.constant 0 : index
    %c0_125 = arith.constant 0 : index
    %296 = vector.load %arg14[%c0_124, %c0_125] : memref<32x128xbf16, #tpu.memory_space<vmem>>, vector<32x128xbf16>
    %cst_126 = arith.constant dense<0.000000e+00> : vector<8x128xf32>
    %297 = tpu.matmul %295, %296, %cst_126 {dimension_numbers = #tpu.dot_dimension_numbers<[1], [0], [0], [1], [0, 0, 1, 1], [], []>} : vector<8x32xbf16>, vector<32x128xbf16>, vector<8x128xf32> -> vector<8x128xf32>
    %c0_127 = arith.constant 0 : index
    %c0_128 = arith.constant 0 : index
    %298 = vector.load %arg15[%c0_127, %c0_128] : memref<1x128xf32, #tpu.memory_space<vmem>>, vector<1x128xf32>
    %299 = vector.broadcast %298 : vector<1x128xf32> to vector<8x128xf32>
    %300 = arith.addf %297, %299 : vector<8x128xf32>
    %301 = vector.shape_cast %300 : vector<8x128xf32> to vector<1x8x128xf32>
    %c0_129 = arith.constant 0 : index
    %c0_130 = arith.constant 0 : index
    %c0_131 = arith.constant 0 : index
    %302 = vector.load %arg16[%c0_129, %c0_130, %c0_131] : memref<1x8x128xf32, #tpu.memory_space<vmem>>, vector<1x8x128xf32>
    tpu.vector_store %arg16[%c0_129, %c0_130, %c0_131], %301 {strides = array<i32>} : memref<1x8x128xf32, #tpu.memory_space<vmem>>, vector<1x8x128xf32>,
    return
  }
  func.func @transform_0(%arg0: i32) -> (i32, i32, i32) {
    %c0_i32 = arith.constant 0 : i32
    %c0_i32_0 = arith.constant 0 : i32
    %c0_i32_1 = arith.constant 0 : i32
    return %arg0, %c0_i32, %c0_i32_0 : i32, i32, i32
  }
  func.func @transform_1(%arg0: i32) -> (i32, i32, i32) {
    %c0_i32 = arith.constant 0 : i32
    %c0_i32_0 = arith.constant 0 : i32
    %c0_i32_1 = arith.constant 0 : i32
    %c0_i32_2 = arith.constant 0 : i32
    return %c0_i32, %c0_i32_0, %c0_i32_1 : i32, i32, i32
  }
  func.func @transform_2(%arg0: i32) -> (i32, i32, i32) {
    %c0_i32 = arith.constant 0 : i32
    %c0_i32_0 = arith.constant 0 : i32
    %c0_i32_1 = arith.constant 0 : i32
    %c0_i32_2 = arith.constant 0 : i32
    return %c0_i32, %c0_i32_0, %c0_i32_1 : i32, i32, i32
  }
  func.func @transform_3(%arg0: i32) -> (i32, i32, i32) {
    %c0_i32 = arith.constant 0 : i32
    %c0_i32_0 = arith.constant 0 : i32
    %c0_i32_1 = arith.constant 0 : i32
    %c0_i32_2 = arith.constant 0 : i32
    return %c0_i32, %c0_i32_0, %c0_i32_1 : i32, i32, i32
  }
  func.func @transform_4(%arg0: i32) -> (i32, i32, i32) {
    %c0_i32 = arith.constant 0 : i32
    %c0_i32_0 = arith.constant 0 : i32
    %c0_i32_1 = arith.constant 0 : i32
    %c0_i32_2 = arith.constant 0 : i32
    return %c0_i32, %c0_i32_0, %c0_i32_1 : i32, i32, i32
  }
  func.func @transform_5(%arg0: i32) -> (i32, i32, i32) {
    %c0_i32 = arith.constant 0 : i32
    %c0_i32_0 = arith.constant 0 : i32
    %c0_i32_1 = arith.constant 0 : i32
    %c0_i32_2 = arith.constant 0 : i32
    return %c0_i32, %c0_i32_0, %c0_i32_1 : i32, i32, i32
  }
  func.func @transform_6(%arg0: i32) -> (i32, i32, i32) {
    %c0_i32 = arith.constant 0 : i32
    %c0_i32_0 = arith.constant 0 : i32
    %c0_i32_1 = arith.constant 0 : i32
    %c0_i32_2 = arith.constant 0 : i32
    return %c0_i32, %c0_i32_0, %c0_i32_1 : i32, i32, i32
  }
  func.func @transform_7(%arg0: i32) -> (i32, i32, i32) {
    %c0_i32 = arith.constant 0 : i32
    %c0_i32_0 = arith.constant 0 : i32
    %c0_i32_1 = arith.constant 0 : i32
    %c0_i32_2 = arith.constant 0 : i32
    return %c0_i32, %c0_i32_0, %c0_i32_1 : i32, i32, i32
  }
  func.func @transform_8(%arg0: i32) -> (i32, i32, i32) {
    %c0_i32 = arith.constant 0 : i32
    %c0_i32_0 = arith.constant 0 : i32
    %c0_i32_1 = arith.constant 0 : i32
    %c0_i32_2 = arith.constant 0 : i32
    return %c0_i32, %c0_i32_0, %c0_i32_1 : i32, i32, i32
  }
  func.func @transform_9(%arg0: i32) -> (i32, i32, i32) {
    %c0_i32 = arith.constant 0 : i32
    %c0_i32_0 = arith.constant 0 : i32
    %c0_i32_1 = arith.constant 0 : i32
    %c0_i32_2 = arith.constant 0 : i32
    return %c0_i32, %c0_i32_0, %c0_i32_1 : i32, i32, i32
  }
  func.func @transform_10(%arg0: i32) -> (i32, i32, i32) {
    %c0_i32 = arith.constant 0 : i32
    %c0_i32_0 = arith.constant 0 : i32
    %c0_i32_1 = arith.constant 0 : i32
    %c0_i32_2 = arith.constant 0 : i32
    return %c0_i32, %c0_i32_0, %c0_i32_1 : i32, i32, i32
  }
  func.func @transform_11(%arg0: i32) -> (i32, i32, i32) {
    %c0_i32 = arith.constant 0 : i32
    %c0_i32_0 = arith.constant 0 : i32
    %c0_i32_1 = arith.constant 0 : i32
    %c0_i32_2 = arith.constant 0 : i32
    return %c0_i32, %c0_i32_0, %c0_i32_1 : i32, i32, i32
  }
  func.func @transform_12(%arg0: i32) -> (i32, i32, i32) {
    %c0_i32 = arith.constant 0 : i32
    %c0_i32_0 = arith.constant 0 : i32
    %c0_i32_1 = arith.constant 0 : i32
    %c0_i32_2 = arith.constant 0 : i32
    return %c0_i32, %c0_i32_0, %c0_i32_1 : i32, i32, i32
  }
  func.func @transform_13(%arg0: i32) -> (i32, i32) {
    %c0_i32 = arith.constant 0 : i32
    %c0_i32_0 = arith.constant 0 : i32
    %c0_i32_1 = arith.constant 0 : i32
    return %c0_i32, %c0_i32_0 : i32, i32
  }
  func.func @transform_14(%arg0: i32) -> (i32, i32) {
    %c0_i32 = arith.constant 0 : i32
    %c0_i32_0 = arith.constant 0 : i32
    %c0_i32_1 = arith.constant 0 : i32
    return %c0_i32, %c0_i32_0 : i32, i32
  }
  func.func @transform_15(%arg0: i32) -> (i32, i32, i32) {
    %c0_i32 = arith.constant 0 : i32
    %c0_i32_0 = arith.constant 0 : i32
    %c0_i32_1 = arith.constant 0 : i32
    return %arg0, %c0_i32, %c0_i32_0 : i32, i32, i32
  }
}

</mosaic_0001>

<bundles_post_ra>
// kernel: bert4rec_forward.1
= control target key start
LH: loop header
LB: loop body
LE: loop exit
PB: predicated region body
PF: predicated region fallthrough
CT: control target
= control target key end

     0   :  { %s2804_s0 = inlined_call_operand.vmem [shape: bf16[2,8,32], index: 0, kind: input, shape index: {}]   ;;  %s2805_s1 = inlined_call_operand.vmem [shape: bf16[2,32,96], index: 1, kind: input, shape index: {}]   ;;  %s2806_s2 = inlined_call_operand.vmem [shape: f32[2,1,96], index: 2, kind: input, shape index: {}]   ;;  %s2807_s3 = inlined_call_operand.vmem [shape: bf16[2,32,32], index: 3, kind: input, shape index: {}]   ;;  %s2808_s4 = inlined_call_operand.vmem [shape: f32[2,1,32], index: 4, kind: input, shape index: {}]   ;;  %s2809_s5 = inlined_call_operand.vmem [shape: f32[2,1,32], index: 5, kind: input, shape index: {}]   ;;  %s2810_s6 = inlined_call_operand.vmem [shape: f32[2,1,32], index: 6, kind: input, shape index: {}]   ;;  %s2811_s7 = inlined_call_operand.vmem [shape: bf16[2,32,128], index: 7, kind: input, shape index: {}]   ;;  %s2812_s8 = inlined_call_operand.vmem [shape: f32[2,1,128], index: 8, kind: input, shape index: {}]   ;;  %s2813_s9 = inlined_call_operand.vmem [shape: bf16[2,128,32], index: 9, kind: input, shape index: {}]   ;;  %s2814_s10 = inlined_call_operand.vmem [shape: f32[2,1,32], index: 10, kind: input, shape index: {}]   ;;  %s2815_s11 = inlined_call_operand.vmem [shape: f32[2,1,32], index: 11, kind: input, shape index: {}]   ;;  %s2816_s12 = inlined_call_operand.vmem [shape: f32[2,1,32], index: 12, kind: input, shape index: {}]   ;;  %s2817_s13 = inlined_call_operand.vmem [shape: bf16[32,128], index: 13, kind: input, shape index: {}]   ;;  %s2818_s14 = inlined_call_operand.vmem [shape: f32[1,128], index: 14, kind: input, shape index: {}]   ;;  %s2819_s15 = inlined_call_operand.hbm [shape: f32[2,8,128], index: 15, kind: output, shape index: {}]  }
   0x1   :  { %2826 = sst [smem:[#allocation6_spill]] %s2804_s0 }
   0x2   :  { %2827 = sst [smem:[#allocation7_spill]] %s2805_s1 }
   0x3   :  { %2828 = sst [smem:[#allocation8_spill]] %s2806_s2 }
   0x4   :  { %20 = vsyncpa [#allocation3], 0 }
   0x5   :  { %22 = vsyncpa [#allocation3 + $0x1], 0  ;;  %s2429_s18 = smov 0   ;;  %s2431_s19 = smov 0  }
   0x6   :  { %s2433_s20 = smov 0   ;;  %s2435_s21 = smov 0  }
   0x7 LB: > { %s2450_s22 = sadd.s32 4294967295, %s2338_s21   ;;  %s1864_s23 = sadd.s32 4294967294, %s2338_s21   ;;  %s2338_s21 = sphi %s2435_s21, %s2845_s21   ;;  %s2334_s20 = sphi %s2433_s20, %s2844_s20   ;;  %s2330_s19 = sphi %s2431_s19, %s2843_s19   ;;  %s2326_s18 = sphi %s2429_s18, %s2842_s18  }
   0x8   : > { %s2454_s24 = sadd.s32 1, %s2338_s21   ;;  %s355_s25 = sadd.s32 1, %s2334_s20 }
   0x9   : > { %s352_s26 = ssub.s32 %s2338_s21, %s2454_s24  ;;  %p365_p0 = scmp.ne.s32.totalorder %s2334_s20, %s2330_s19 }
   0xa   : > { %p353_p1 = scmp.eq.s32.totalorder %s352_s26, 0  ;;  %p366_p2 = scmp.eq.s32.totalorder %s2450_s22, 1 }
   0xb   : > { %p371_p3 = scmp.ne.s32.totalorder %s2330_s19, %s2326_s18  ;;  %p372_p4 = scmp.eq.s32.totalorder %s1864_s23, 1 }
   0xc   : > { %s2465_s27 = scalar_select %p353_p1, %s2334_s20, %s355_s25  }
   0xd   : > { %p2467_p5 = por %p366_p2, %p365_p0  ;;  %p2471_p6 = por %p372_p4, %p371_p3 }
   0xe   : > { %2829 = sst [smem:[#allocation5_spill]] %s2465_s27  ;;  %p1867_p7 = scmp.ge.s32.totalorder %s2338_s21, 1 }
   0xf   : > { %p439_p8 = scmp.lt.s32.totalorder %s2338_s21, 3 }
  0x11   : > { %p440_p9 = pnand %p1867_p7, %p439_p8 }
  0x12   : > { %s2832_s1 = sld [smem:[#allocation7_spill]] (!%p440_p9)  ;;  %v2340_v1 = vmov (!%p440_p9), 0.0   ;;  %vm2341_vm0 = vmmov (!%p440_p9), 0   ;;  %p486_p10 = scmp.lt.s32.totalorder (!%p440_p9), %s2450_s22, 1  ;;  %vm516_vm1 = vcmask (!%p440_p9), 261120   ;;  %vm564_vm2 = vcmask (!%p440_p9), 130048  }
  0x13   : > { %443 = sbr.rel (%p440_p9) target bundleno = 5804 (0x16ac), region = 80  ;;  %2027 = vmatprep.subr.bf16.mxu1 (!%p440_p9), %v2340_v1  ;;  %2041 = vmatprep.subr.bf16.mxu0 (!%p440_p9), %v2340_v1  ;;  %s2833_s0 = sld [smem:[#allocation6_spill]] (!%p440_p9)  ;;  %vm611_vm3 = vcmask (!%p440_p9), 64512   ;;  %vm629_vm4 = vcmask (!%p440_p9), 1043456   ;;  %v2220_v48 = vld [vmem:[%s2807_s3] sm:$0xff] (!%p440_p9)   ;;  %v2221_v49 = vld [vmem:[%s2807_s3 + $0x8] sm:$0xff] (!%p440_p9)  }
  0x14   : > { %2031 = vmatprep.mubr.msk.bf16.mxu1 (!%p440_p9), %vm2341_vm0, %v2340_v1  ;;  %2043 = vmatprep.mubr.msk.bf16.mxu0 (!%p440_p9), %vm2341_vm0, %v2340_v1  ;;  %s2834_s2 = sld [smem:[#allocation8_spill]] (!%p440_p9)  ;;  %s2821_s30 = smov (!%p440_p9), 64   ;;  %v1878_v61 = vld [vmem:[%s2808_s4] ss:$0 sm:$0xff] (!%p440_p9) }
  0x15   : > { %s2820_s16 = smov (!%p440_p9), 48  }
  0x18   : > { %v2218_v0 = vld [vmem:[%s2832_s1] sm:$0xff] (!%p440_p9)   ;;  %v2219_v2 = vld [vmem:[%s2832_s1 + $0x8] sm:$0xff] (!%p440_p9)  }
  0x19   : > { %2028 = vmatpush3.bf16.msra.mxu1 (!%p440_p9), %v2218_v0 }
  0x1a   : > { %2029 = vmatprep.subr.bf16.mxu1 %v2340_v1  ;;  %s487_s25 = scalar_select %p486_p10, %s2450_s22, 1  ;;  %v1870_v4 = vld [vmem:[%s2834_s2] ss:$0 sm:$0xff] }
  0x1c   : > { %s1869_s26 = sshll.u32 %s487_s25, 2  ;;  %s2822_s25 = smov 112  }
  0x1d   : > { %2030 = vmatpush3.bf16.msra.mxu1 %v2219_v2  ;;  %s489_s27 = scalar_lea.vmem %s2833_s0, %s1869_s26  ;;  %s2824_s26 = smov 80  }
  0x1e   : > { %2035 = vmatprep.subr.bf16.mxu1 %v2340_v1  ;;  %v2496_v3 = vld [vmem:[%s489_s27] sm:$0xf]  ;;  %s2825_s27 = smov 96   ;;  %s2836_s0 = smov 80  }
  0x1f   : > { %v492_v62 = vunpack.c.l.bf16 %v2496_v3 }
  0x20   : > { %2032 = vmatmul.mubr.msk.bf16.vlgmr.msra.gmra.mrb[0].mxu1 %vm516_vm1, %v2496_v3  ;;  %v2222_v3 = vld [vmem:[%s2811_s7] sm:$0xff]  }
  0x21   : > { %2037 = vmatprep.mubr.msk.bf16.mxu1 %vm2341_vm0, %v2340_v1 }
  0xf3   : > { %v554_v5 = vpop.f32.mrb[0].mxu1 }
  0xf4   : > { %v555_v6 = vadd.f32 %v1870_v4, %v554_v5  ;;  %v2033_v7 = vpop.f32.mrb[1].mxu1 }
  0xf5   : > { %v557_v8 = vpop.f32.mrb[2].mxu1 }
  0xf6   : > { %v560_v9 = vpack.c.bf16 %v555_v6, %v555_v6  ;;  %v2034_v10 = vpop.f32.mrb[3].mxu1 }
  0xf8   : > { %673 = vrot.lane.b32.xlu1 %v560_v9, %s2822_s25  ;;  %562 = vrot.lane.b32.xlu0 %v560_v9, %s2825_s27  ;;  %s2823_s25 = smov 16   ;;  %s2837_s27 = smov 112  }
  0xfc   : > { %675 = vrot.lane.b32.xlu0 %v560_v9, %s2824_s26 }
 0x16a   : > { %v563_v11 = vpop.permute.xlu0 %562  ;;  %v674_v15 = vpop.permute.xlu1 %673 }
 0x16b   : > { %v569_v12 = vsel %vm564_vm2, %v563_v11, 0 }
 0x16c   : > { %2036 = vmatpush3.bf16.xpose.msra.mxu1 %v569_v12 }
 0x16d   : > { %2047 = vmatprep.subr.bf16.mxu1 %v2340_v1 }
 0x16e   : > { %v676_v13 = vpop.permute.xlu0 %675 }
 0x16f   : > { %v681_v14 = vsel %vm564_vm2, %v676_v13, 0  ;;  %v2223_v13 = vld [vmem:[%s2811_s7 + $0x8] sm:$0xff]  }
 0x173   : > { %2038 = vmatmul.mubr.msk.bf16.vlgmr.msra.gmra.mrb[4].mxu1 %vm564_vm2, %v560_v9 }
 0x174   : > { %2048 = vmatpush3.bf16.xpose.msra.mxu1 %v681_v14  ;;  %2049 = vmatprep.mubr.msk.bf16.mxu1 %vm2341_vm0, %v2340_v1  ;;  %v2224_v14 = vld [vmem:[%s2813_s9] sm:$0xff]  }
 0x175   : > { %2059 = vmatprep.subr.bf16.mxu1 %v2340_v1 }
 0x17b   : > { %2050 = vmatmul.mubr.msk.bf16.vlgmr.msra.gmra.mrb[8].mxu1 %vm564_vm2, %v674_v15 }
 0x17c   : > { %2063 = vmatprep.mubr.msk.bf16.mxu1 %vm2341_vm0, %v2340_v1  ;;  %2060 = vmatpush3.bf16.msra.mxu1 %v2220_v48  ;;  %v1888_v48 = vld [vmem:[%s2814_s10] ss:$0 sm:$0xff] }
 0x17d   : > { %2061 = vmatprep.subr.bf16.mxu1 %v2340_v1 }
 0x180   : > { %2062 = vmatpush3.bf16.msra.mxu1 %v2221_v49 }
 0x181   : > { %2075 = vmatprep.subr.bf16.mxu1 %v2340_v1 }
 0x246   : > { %v605_v16 = vpop.f32.mrb[4].mxu1 }
 0x247   : > { %v2039_v17 = vpop.f32.mrb[5].mxu1  ;;  %v612_v18 = vsel %vm611_vm3, %v605_v16, -inf }
 0x248   : > { %613 = vmax.xlane.f32.xlu1 %v612_v18  ;;  %v608_v19 = vpop.f32.mrb[6].mxu1 }
 0x249   : > { %v2040_v20 = vpop.f32.mrb[7].mxu1  ;;  %v1882_v19 = vld [vmem:[%s2809_s5] ss:$0 sm:$0xff] }
 0x24e   : > { %v717_v21 = vpop.f32.mrb[8].mxu1 }
 0x24f   : > { %v2051_v22 = vpop.f32.mrb[9].mxu1  ;;  %v723_v23 = vsel %vm611_vm3, %v717_v21, -inf }
 0x250   : > { %724 = vmax.xlane.f32.xlu0 %v723_v23  ;;  %v720_v24 = vpop.f32.mrb[10].mxu1 }
 0x251   : > { %v2052_v25 = vpop.f32.mrb[11].mxu1 }
 0x252   : > { %v2225_v25 = vld [vmem:[%s2813_s9 + $0x8] sm:$0xff]  }
 0x2d5   : > { %v614_v26 = vpop.xlane.xlu1 %613 }
 0x2d6   : > { %v615_v27 = vsub.f32 %v605_v16, %v614_v26  ;;  %v2226_v26 = vld [vmem:[%s2813_s9 + $0x10] sm:$0xff]  }
 0x2d8   : > { %v616_v28 = vmul.f32 1.442695, %v615_v27  ;;  %v2227_v27 = vld [vmem:[%s2813_s9 + $0x18] sm:$0xff]  }
 0x2da   : > { %2248 = vpow2.f32 %v616_v28  ;;  %v2228_v28 = vld [vmem:[%s2813_s9 + $0x20] sm:$0xff]  }
 0x2dd   : > { %v725_v29 = vpop.xlane.xlu0 %724 }
 0x2de   : > { %v726_v30 = vsub.f32 %v717_v21, %v725_v29  ;;  %v1883_v21 = vld [vmem:[%s2810_s6] ss:$0 sm:$0xff]  ;;  %v2229_v29 = vld [vmem:[%s2813_s9 + $0x28] sm:$0xff]  }
 0x2e0   : > { %v727_v31 = vmul.f32 1.442695, %v726_v30  ;;  %v2230_v30 = vld [vmem:[%s2813_s9 + $0x30] sm:$0xff]  }
 0x2e2   : > { %2250 = vpow2.f32 %v727_v31  ;;  %v2231_v31 = vld [vmem:[%s2813_s9 + $0x38] sm:$0xff]  }
 0x2e4   : > { %v2249_v32 = vpop.eup %2248 }
 0x2e5   : > { %v618_v33 = vsel %vm611_vm3, %v2249_v32, 0.0 }
 0x2e6   : > { %619 = vadd.xlane.f32.xlu0 %v618_v33 }
 0x2ec   : > { %v2251_v34 = vpop.eup %2250 }
 0x2ed   : > { %v729_v35 = vsel %vm611_vm3, %v2251_v34, 0.0 }
 0x2ee   : > { %730 = vadd.xlane.f32.xlu1 %v729_v35 }
 0x2fc   : > { %624 = vrot.lane.b32.xlu0 %v560_v9, %s2821_s30  ;;  %s2835_s30 = smov 96  }
 0x2ff   : > { %735 = vrot.lane.b32.xlu1 %v560_v9, %s2820_s16  ;;  %s2838_s16 = smov 64  }
 0x373   : > { %v620_v36 = vpop.xlane.xlu0 %619 }
 0x374   : > { %2252 = vrcp.f32 %v620_v36 }
 0x377   : > { %v625_v37 = vpop.permute.xlu0 %624 }
 0x378   : > { %v631_v38 = vsel %vm629_vm4, %v625_v37, 0 }
 0x379   : > { %2042 = vmatpush3.bf16.msra.mxu0 %v631_v38 }
 0x37a   : > { %2053 = vmatprep.subr.bf16.mxu0 %v2340_v1 }
 0x37b   : > { %v731_v39 = vpop.xlane.xlu1 %730 }
 0x37c   : > { %2254 = vrcp.f32 %v731_v39 }
 0x37e   : > { %v2253_v40 = vpop.eup %2252 }
 0x37f   : > { %v622_v41 = vmul.f32 %v2253_v40, %v2249_v32  ;;  %v736_v42 = vpop.permute.xlu1 %735  ;;  %v1884_v32 = vld [vmem:[%s2812_s8] ss:$0 sm:$0xff] }
 0x380   : > { %v741_v44 = vsel %vm629_vm4, %v736_v42, 0 }
 0x381   : > { %v623_v43 = vpack.c.bf16 %v622_v41, %v622_v41 }
 0x383   : > { %2044 = vmatmul.mubr.msk.bf16.vlgmr.msra.gmra.mrb[0].mxu0 %vm611_vm3, %v623_v43 }
 0x384   : > { %2054 = vmatpush3.bf16.msra.mxu0 %v741_v44  ;;  %2055 = vmatprep.mubr.msk.bf16.mxu0 %vm2341_vm0, %v2340_v1 }
 0x385   : > { %2067 = vmatprep.subr.bf16.mxu0 %v2340_v1 }
 0x386   : > { %v2255_v45 = vpop.eup %2254 }
 0x387   : > { %v733_v46 = vmul.f32 %v2255_v45, %v2251_v34 }
 0x389   : > { %v734_v47 = vpack.c.bf16 %v733_v46, %v733_v46 }
 0x38b   : > { %2056 = vmatmul.mubr.msk.bf16.vlgmr.msra.gmra.mrb[4].mxu0 %vm611_vm3, %v734_v47 }
 0x38c   : > { %2071 = vmatprep.mubr.msk.bf16.mxu0 %vm2341_vm0, %v2340_v1  ;;  %2068 = vmatpush3.bf16.msra.mxu0 %v2222_v3 }
 0x38d   : > { %2069 = vmatprep.subr.bf16.mxu0 %v2340_v1 }
 0x390   : > { %2070 = vmatpush3.bf16.msra.mxu0 %v2223_v13 }
 0x391   : > { %2095 = vmatprep.subr.bf16.mxu0 %v2340_v1 }
 0x456   : > { %v667_v50 = vpop.f32.mrb[0].mxu0 }
 0x457   : > { %v2045_v51 = vpop.f32.mrb[1].mxu0 }
 0x458   : > { %v670_v52 = vpop.f32.mrb[2].mxu0 }
 0x459   : > { %v2046_v53 = vpop.f32.mrb[3].mxu0 }
 0x45e   : > { %v777_v54 = vpop.f32.mrb[4].mxu0 }
 0x45f   : > { %784 = vrot.lane.b32.xlu1 %v777_v54, %s2823_s25  ;;  %v2057_v55 = vpop.f32.mrb[5].mxu0  ;;  %s2839_s25 = smov 48  }
 0x460   : > { %v780_v56 = vpop.f32.mrb[6].mxu0 }
 0x461   : > { %v2058_v57 = vpop.f32.mrb[7].mxu0 }
 0x4d1   : > { %v785_v58 = vpop.permute.xlu1 %784 }
 0x4d2   : > { %v787_v59 = vsel %vm564_vm2, %v667_v50, %v785_v58 }
 0x4d3   : > { %v788_v60 = vpack.c.bf16 %v787_v59, %v787_v59 }
 0x4d5   : > { %2064 = vmatmul.mubr.msk.bf16.vlgmr.msra.gmra.mrb[12].mxu1 %vm516_vm1, %v788_v60 }
 0x4d6   : > { %2091 = vmatprep.mubr.msk.bf16.mxu1 %vm2341_vm0, %v2340_v1  ;;  %2076 = vmatpush3.bf16.msra.mxu1 %v2224_v14 }
 0x4d7   : > { %2077 = vmatprep.subr.bf16.mxu1 %v2340_v1 }
 0x4da   : > { %2078 = vmatpush3.bf16.msra.mxu1 %v2225_v25 }
 0x4db   : > { %2079 = vmatprep.subr.bf16.mxu1 %v2340_v1 }
 0x4de   : > { %2080 = vmatpush3.bf16.msra.mxu1 %v2226_v26 }
 0x4df   : > { %2081 = vmatprep.subr.bf16.mxu1 %v2340_v1 }
 0x4e2   : > { %2082 = vmatpush3.bf16.msra.mxu1 %v2227_v27 }
 0x4e3   : > { %2083 = vmatprep.subr.bf16.mxu1 %v2340_v1 }
 0x4e6   : > { %2084 = vmatpush3.bf16.msra.mxu1 %v2228_v28 }
 0x4e7   : > { %2085 = vmatprep.subr.bf16.mxu1 %v2340_v1 }
 0x4ea   : > { %2086 = vmatpush3.bf16.msra.mxu1 %v2229_v29 }
 0x4eb   : > { %2087 = vmatprep.subr.bf16.mxu1 %v2340_v1 }
 0x4ee   : > { %2088 = vmatpush3.bf16.msra.mxu1 %v2230_v30 }
 0x4ef   : > { %2089 = vmatprep.subr.bf16.mxu1 %v2340_v1 }
 0x4f2   : > { %2090 = vmatpush3.bf16.msra.mxu1 %v2231_v31 }
 0x4f3   : > { %2121 = vmatprep.subr.bf16.mxu1 %v2340_v1 }
 0x5a8   : > { %v849_v63 = vpop.f32.mrb[12].mxu1 }
 0x5a9   : > { %v850_v0 = vadd.f32 %v1878_v61, %v849_v63  ;;  %v2065_v2 = vpop.f32.mrb[13].mxu1  ;;  %v2232_v61 = vld [vmem:[%s2832_s1 + $0x10] sm:$0xff]  }
 0x5aa   : > { %v852_v4 = vpop.f32.mrb[14].mxu1 }
 0x5ab   : > { %v2066_v5 = vpop.f32.mrb[15].mxu1  ;;  %v855_v6 = vadd.f32 %v850_v0, %v492_v62  ;;  %v2233_v62 = vld [vmem:[%s2832_s1 + $0x18] sm:$0xff]   ;;  %s1969_s1 = sshll.u32 %s2450_s22, 7 }
 0x5ac   : > { %v1897_v5 = vld [vmem:[%s2815_s11] ss:$0 sm:$0xff] }
 0x5ad   : > { %v858_v7 = vsel %vm516_vm1, %v855_v6, 0.0 }
 0x5ae   : > { %859 = vadd.xlane.f32.xlu0 %v858_v7  ;;  %v1898_v7 = vld [vmem:[%s2816_s12] ss:$0 sm:$0xff] }
 0x63b   : > { %v860_v8 = vpop.xlane.xlu0 %859 }
 0x63c   : > { %v862_v9 = vmul.f32 0.03125, %v860_v8 }
 0x63e   : > { %v863_v10 = vsub.f32 %v855_v6, %v862_v9 }
 0x640   : > { %v864_v11 = vmul.f32 %v863_v10, %v863_v10 }
 0x642   : > { %v865_v12 = vsel %vm516_vm1, %v864_v11, 0.0  ;;  %v1904_v11 = vld [vmem:[%s2834_s2 + $0x1] ss:$0 sm:$0xff]  ;;  %s2762_s2 = scalar_lea.hbm %s2819_s15, %s1969_s1 }
 0x643   : > { %866 = vadd.xlane.f32.xlu1 %v865_v12 }
 0x6d0   : > { %v867_v15 = vpop.xlane.xlu1 %866 }
 0x6d1   : > { %v868_v16 = vmul.f32 0.03125, %v867_v15 }
 0x6d3   : > { %v869_v17 = vadd.f32 1e-05, %v868_v16 }
 0x6d5   : > { %2256 = vrsqrt.f32 %v869_v17 }
 0x6df   : > { %v2257_v18 = vpop.eup %2256 }
 0x6e0   : > { %v871_v20 = vmul.f32 %v2257_v18, %v863_v10 }
 0x6e2   : > { %v878_v22 = vmul.f32 %v1882_v19, %v871_v20 }
 0x6e4   : > { %v885_v23 = vadd.f32 %v1883_v21, %v878_v22 }
 0x6e6   : > { %v886_v24 = vpack.c.bf16 %v885_v23, %v885_v23 }
 0x6e8   : > { %2072 = vmatmul.mubr.msk.bf16.vlgmr.msra.gmra.mrb[8].mxu0 %vm516_vm1, %v886_v24 }
 0x6e9   : > { %2099 = vmatprep.mubr.msk.bf16.mxu0 %vm2341_vm0, %v2340_v1  ;;  %2096 = vmatpush3.bf16.msra.mxu0 %v2232_v61 }
 0x6ea   : > { %2097 = vmatprep.subr.bf16.mxu0 %v2340_v1 }
 0x6ed   : > { %2098 = vmatpush3.bf16.msra.mxu0 %v2233_v62 }
 0x6ee   : > { %2103 = vmatprep.subr.bf16.mxu0 %v2340_v1 }
 0x7bb   : > { %v947_v33 = vpop.f32.mrb[8].mxu0 }
 0x7bc   : > { %v948_v34 = vadd.f32 %v1884_v32, %v947_v33  ;;  %v2073_v35 = vpop.f32.mrb[9].mxu0 }
 0x7bd   : > { %v950_v36 = vpop.f32.mrb[10].mxu0 }
 0x7be   : > { %v954_v37 = vmul.f32 0.044715, %v948_v34  ;;  %v2074_v38 = vpop.f32.mrb[11].mxu0  ;;  %v953_v44 = vmul.f32 0.5, %v948_v34 }
 0x7c0   : > { %v955_v39 = vmul.f32 %v954_v37, %v948_v34 }
 0x7c2   : > { %v956_v40 = vmul.f32 %v955_v39, %v948_v34 }
 0x7c4   : > { %v957_v41 = vadd.f32 %v956_v40, %v948_v34 }
 0x7c6   : > { %v958_v42 = vmul.f32 0.7978846, %v957_v41 }
 0x7c8   : > { %2258 = vtanh.f32 %v958_v42 }
 0x7d2   : > { %v2259_v43 = vpop.eup %2258 }
 0x7d3   : > { %v960_v45 = vadd.f32 1.0, %v2259_v43 }
 0x7d5   : > { %v961_v46 = vmul.f32 %v960_v45, %v953_v44 }
 0x7d7   : > { %v962_v47 = vpack.c.bf16 %v961_v46, %v961_v46 }
 0x7d9   : > { %2092 = vmatmul.mubr.bf16.vlgmr.msra.gmra.mrb[16].mxu1 %v962_v47 }
 0x7da   : > { %2123 = vmatprep.mubr.msk.bf16.mxu1 %vm2341_vm0, %v2340_v1 }
 0x8ac   : > { %v1068_v49 = vpop.f32.mrb[16].mxu1 }
 0x8ad   : > { %v1069_v50 = vadd.f32 %v1888_v48, %v1068_v49  ;;  %v2093_v51 = vpop.f32.mrb[17].mxu1 }
 0x8ae   : > { %v1071_v52 = vpop.f32.mrb[18].mxu1 }
 0x8af   : > { %v2094_v53 = vpop.f32.mrb[19].mxu1  ;;  %v1074_v54 = vadd.f32 %v1069_v50, %v885_v23 }
 0x8b1   : > { %v1077_v55 = vsel %vm516_vm1, %v1074_v54, 0.0 }
 0x8b2   : > { %1078 = vadd.xlane.f32.xlu0 %v1077_v55 }
 0x93f   : > { %v1079_v56 = vpop.xlane.xlu0 %1078 }
 0x940   : > { %v1080_v57 = vmul.f32 0.03125, %v1079_v56 }
 0x942   : > { %v1081_v58 = vsub.f32 %v1074_v54, %v1080_v57 }
 0x944   : > { %v1082_v59 = vmul.f32 %v1081_v58, %v1081_v58 }
 0x946   : > { %v1083_v60 = vsel %vm516_vm1, %v1082_v59, 0.0  ;;  %v2235_v59 = vld [vmem:[%s2807_s3 + $0x18] sm:$0xff]  }
 0x947   : > { %1084 = vadd.xlane.f32.xlu0 %v1083_v60 }
 0x9d4   : > { %v1085_v63 = vpop.xlane.xlu0 %1084 }
 0x9d5   : > { %v1086_v0 = vmul.f32 0.03125, %v1085_v63 }
 0x9d7   : > { %v1087_v2 = vadd.f32 1e-05, %v1086_v0 }
 0x9d9   : > { %2260 = vrsqrt.f32 %v1087_v2 }
 0x9e3   : > { %v2261_v4 = vpop.eup %2260 }
 0x9e4   : > { %v1089_v6 = vmul.f32 %v2261_v4, %v1081_v58  ;;  %v2234_v58 = vld [vmem:[%s2807_s3 + $0x10] sm:$0xff]  }
 0x9e6   : > { %v1096_v8 = vmul.f32 %v1897_v5, %v1089_v6  ;;  %v1917_v5 = vld [vmem:[%s2808_s4 + $0x1] ss:$0 sm:$0xff] }
 0x9e8   : > { %v2626_v9 = vadd.f32 %v1898_v7, %v1096_v8 }
 0x9ea   : > { %v1104_v10 = vpack.c.bf16 %v2626_v9, %v2626_v9 }
 0x9ec   : > { %2100 = vmatmul.mubr.msk.bf16.vlgmr.msra.gmra.mrb[12].mxu0 %vm516_vm1, %v1104_v10 }
 0x9ed   : > { %2105 = vmatprep.mubr.msk.bf16.mxu0 %vm2341_vm0, %v2340_v1 }
 0xabf   : > { %v1167_v12 = vpop.f32.mrb[12].mxu0 }
 0xac0   : > { %v1168_v3 = vadd.f32 %v1904_v11, %v1167_v12  ;;  %v2101_v13 = vpop.f32.mrb[13].mxu0 }
 0xac1   : > { %v1170_v14 = vpop.f32.mrb[14].mxu0 }
 0xac2   : > { %v1173_v15 = vpack.c.bf16 %v1168_v3, %v1168_v3  ;;  %v2102_v16 = vpop.f32.mrb[15].mxu0 }
 0xac4   : > { %1175 = vrot.lane.b32.xlu1 %v1173_v15, %s2835_s30  ;;  %s483_s30 = sand.u32 1, %s2330_s19  }
 0xac8   : > { %1285 = vrot.lane.b32.xlu1 %v1173_v15, %s2836_s0  ;;  %s2840_s0 = smov 16  }
 0xacc   : > { %1283 = vrot.lane.b32.xlu1 %v1173_v15, %s2837_s27  ;;  %s1792_s27 = scalar_lea.sflag [#allocation3], %s483_s30 }
 0xb36   : > { %v1176_v17 = vpop.permute.xlu1 %1175 }
 0xb37   : > { %v1181_v18 = vsel %vm564_vm2, %v1176_v17, 0 }
 0xb38   : > { %2104 = vmatpush3.bf16.xpose.msra.mxu0 %v1181_v18  ;;  %v2236_v18 = vld [vmem:[%s2811_s7 + $0x10] sm:$0xff]  }
 0xb39   : > { %2109 = vmatprep.subr.bf16.mxu0 %v2340_v1 }
 0xb3a   : > { %v1286_v34 = vpop.permute.xlu1 %1285 }
 0xb3b   : > { %v1291_v36 = vsel %vm564_vm2, %v1286_v34, 0  ;;  %v2243_v34 = vld [vmem:[%s2813_s9 + $0x68] sm:$0xff]  }
 0xb3e   : > { %v1284_v37 = vpop.permute.xlu1 %1283 }
 0xb3f   : > { %2106 = vmatmul.mubr.msk.bf16.vlgmr.msra.gmra.mrb[16].mxu0 %vm564_vm2, %v1173_v15 }
 0xb40   : > { %2111 = vmatprep.mubr.msk.bf16.mxu0 %vm2341_vm0, %v2340_v1 }
 0xc12   : > { %v1217_v19 = vpop.f32.mrb[16].mxu0 }
 0xc13   : > { %v2107_v20 = vpop.f32.mrb[17].mxu0  ;;  %v1223_v21 = vsel %vm611_vm3, %v1217_v19, -inf }
 0xc14   : > { %1224 = vmax.xlane.f32.xlu0 %v1223_v21  ;;  %v1220_v22 = vpop.f32.mrb[18].mxu0 }
 0xc15   : > { %v2108_v23 = vpop.f32.mrb[19].mxu0 }
 0xca1   : > { %v1225_v24 = vpop.xlane.xlu0 %1224 }
 0xca2   : > { %v1226_v25 = vsub.f32 %v1217_v19, %v1225_v24  ;;  %v2237_v19 = vld [vmem:[%s2811_s7 + $0x18] sm:$0xff]   ;;  %v1923_v24 = vld [vmem:[%s2809_s5 + $0x1] ss:$0 sm:$0xff] }
 0xca4   : > { %v1227_v26 = vmul.f32 1.442695, %v1226_v25 }
 0xca6   : > { %2262 = vpow2.f32 %v1227_v26  ;;  %v1924_v26 = vld [vmem:[%s2810_s6 + $0x1] ss:$0 sm:$0xff] }
 0xcb0   : > { %v2263_v27 = vpop.eup %2262 }
 0xcb1   : > { %v1229_v28 = vsel %vm611_vm3, %v2263_v27, 0.0 }
 0xcb2   : > { %1230 = vadd.xlane.f32.xlu0 %v1229_v28 }
 0xcc8   : > { %1235 = vrot.lane.b32.xlu0 %v1173_v15, %s2838_s16 }
 0xd3f   : > { %v1231_v29 = vpop.xlane.xlu0 %1230 }
 0xd40   : > { %2264 = vrcp.f32 %v1231_v29 }
 0xd43   : > { %v1236_v30 = vpop.permute.xlu0 %1235 }
 0xd44   : > { %v1241_v31 = vsel %vm629_vm4, %v1236_v30, 0  ;;  %v2239_v30 = vld [vmem:[%s2813_s9 + $0x48] sm:$0xff]  }
 0xd45   : > { %2110 = vmatpush3.bf16.msra.mxu0 %v1241_v31  ;;  %v2240_v31 = vld [vmem:[%s2813_s9 + $0x50] sm:$0xff]  }
 0xd46   : > { %2115 = vmatprep.subr.bf16.mxu0 %v2340_v1 }
 0xd4a   : > { %v2265_v32 = vpop.eup %2264 }
 0xd4b   : > { %v1233_v33 = vmul.f32 %v2265_v32, %v2263_v27  ;;  %v2241_v32 = vld [vmem:[%s2813_s9 + $0x58] sm:$0xff]  }
 0xd4d   : > { %v1234_v35 = vpack.c.bf16 %v1233_v33, %v1233_v33  ;;  %v2242_v33 = vld [vmem:[%s2813_s9 + $0x60] sm:$0xff]  }
 0xd4f   : > { %2112 = vmatmul.mubr.msk.bf16.vlgmr.msra.gmra.mrb[20].mxu0 %vm611_vm3, %v1234_v35  ;;  %v2244_v35 = vld [vmem:[%s2813_s9 + $0x70] sm:$0xff]  }
 0xd50   : > { %2116 = vmatpush3.bf16.xpose.msra.mxu0 %v1291_v36  ;;  %2117 = vmatprep.mubr.msk.bf16.mxu0 %vm2341_vm0, %v2340_v1  ;;  %v2245_v36 = vld [vmem:[%s2813_s9 + $0x78] sm:$0xff]  }
 0xd51   : > { %2127 = vmatprep.subr.bf16.mxu0 %v2340_v1 }
 0xd57   : > { %2118 = vmatmul.mubr.msk.bf16.vlgmr.msra.gmra.mrb[24].mxu0 %vm564_vm2, %v1284_v37  ;;  %v1930_v37 = vld [vmem:[%s2812_s8 + $0x1] ss:$0 sm:$0xff] }
 0xd58   : > { %2131 = vmatprep.mubr.msk.bf16.mxu0 %vm2341_vm0, %v2340_v1  ;;  %2128 = vmatpush3.bf16.msra.mxu0 %v2234_v58 }
 0xd59   : > { %2129 = vmatprep.subr.bf16.mxu0 %v2340_v1 }
 0xd5c   : > { %2130 = vmatpush3.bf16.msra.mxu0 %v2235_v59 }
 0xd5d   : > { %2143 = vmatprep.subr.bf16.mxu0 %v2340_v1 }
 0xe22   : > { %v1277_v38 = vpop.f32.mrb[20].mxu0 }
 0xe23   : > { %v2113_v39 = vpop.f32.mrb[21].mxu0 }
 0xe24   : > { %v1280_v40 = vpop.f32.mrb[22].mxu0 }
 0xe25   : > { %v2114_v41 = vpop.f32.mrb[23].mxu0 }
 0xe2a   : > { %v1327_v42 = vpop.f32.mrb[24].mxu0 }
 0xe2b   : > { %v2119_v43 = vpop.f32.mrb[25].mxu0  ;;  %v1333_v44 = vsel %vm611_vm3, %v1327_v42, -inf }
 0xe2c   : > { %1334 = vmax.xlane.f32.xlu1 %v1333_v44  ;;  %v1330_v45 = vpop.f32.mrb[26].mxu0 }
 0xe2d   : > { %v2120_v46 = vpop.f32.mrb[27].mxu0 }
 0xe3d   : > { %1345 = vrot.lane.b32.xlu1 %v1173_v15, %s2839_s25 }
 0xeb9   : > { %v1335_v47 = vpop.xlane.xlu1 %1334 }
 0xeba   : > { %v1336_v48 = vsub.f32 %v1327_v42, %v1335_v47 }
 0xebc   : > { %v1337_v49 = vmul.f32 1.442695, %v1336_v48 }
 0xebd   : > { %v1346_v50 = vpop.permute.xlu1 %1345 }
 0xebe   : > { %2266 = vpow2.f32 %v1337_v49  ;;  %v1351_v51 = vsel %vm629_vm4, %v1346_v50, 0 }
 0xebf   : > { %2122 = vmatpush3.bf16.msra.mxu1 %v1351_v51 }
 0xec0   : > { %2135 = vmatprep.subr.bf16.mxu1 %v2340_v1 }
 0xec8   : > { %v2267_v52 = vpop.eup %2266 }
 0xec9   : > { %v1339_v53 = vsel %vm611_vm3, %v2267_v52, 0.0 }
 0xeca   : > { %1340 = vadd.xlane.f32.xlu0 %v1339_v53  ;;  %v1951_v53 = vld [vmem:[%s2814_s10 + $0x1] ss:$0 sm:$0xff] }
 0xf57   : > { %v1341_v54 = vpop.xlane.xlu0 %1340 }
 0xf58   : > { %2268 = vrcp.f32 %v1341_v54 }
 0xf62   : > { %v2269_v55 = vpop.eup %2268 }
 0xf63   : > { %v1343_v56 = vmul.f32 %v2269_v55, %v2267_v52 }
 0xf65   : > { %v1344_v57 = vpack.c.bf16 %v1343_v56, %v1343_v56 }
 0xf67   : > { %2124 = vmatmul.mubr.msk.bf16.vlgmr.msra.gmra.mrb[20].mxu1 %vm611_vm3, %v1344_v57 }
 0xf68   : > { %2139 = vmatprep.mubr.msk.bf16.mxu1 %vm2341_vm0, %v2340_v1  ;;  %2136 = vmatpush3.bf16.msra.mxu1 %v2236_v18 }
 0xf69   : > { %2137 = vmatprep.subr.bf16.mxu1 %v2340_v1 }
 0xf6c   : > { %2138 = vmatpush3.bf16.msra.mxu1 %v2237_v19 }
 0xf6d   : > { %2163 = vmatprep.subr.bf16.mxu1 %v2340_v1 }
0x103a   : > { %v1387_v60 = vpop.f32.mrb[20].mxu1 }
0x103b   : > { %1394 = vrot.lane.b32.xlu0 %v1387_v60, %s2840_s0  ;;  %v2125_v61 = vpop.f32.mrb[21].mxu1  ;;  %s1868_s0 = sshll.u32 %s483_s30, 3 }
0x103c   : > { %v1390_v62 = vpop.f32.mrb[22].mxu1  ;;  %s485_s25 = scalar_lea.vmem [#allocation2], %s1868_s0  ;;  %s2348_s0 = smov [#allocation2]  }
0x103d   : > { %v2126_v63 = vpop.f32.mrb[23].mxu1  ;;  %s1805_s26 = sshll.u32 %s485_s25, 4  ;;  %s2280_s16 = sshll.u32 %s2348_s0, 4  ;;  %s2764_s26 = int_to_ptr.vmem [resolvable:$true] %s1805_s26  ;;  %s2281_s16 = int_to_ptr.vmem [resolvable:$false] %s2280_s16 }
0x103e   : > { %s2276_s22 = scalar_lea.vmem %s2764_s26, 128  ;;  %s2282_s17 = scalar_lea.vmem %s2281_s16, 256 }
0x103f   : > { %p2277_p11 = scmp.ne.s32.totalorder %s2764_s26, %s2276_s22  ;;  %p2283_p0 = scmp.lt.s32.totalorder %s2764_s26, %s2281_s16 }
0x1040   : > { %p2284_p1 = scmp.lt.s32.totalorder %s2282_s17, %s2276_s22 }
0x1041   : > { %p2278_p12 = pnand %p2277_p11, %p2467_p5 }
0x1042   : > { %p2285_p2 = por %p2284_p1, %p2283_p0 }
0x1043   : > { %p2279_p13 = pneg %p2278_p12 }
0x1045   : > { %p2286_p3 = pnand %p2285_p2, %p2279_p13 }
0x10ad   : > { %v1395_v0 = vpop.permute.xlu0 %1394 }
0x10ae   : > { %v1397_v2 = vsel %vm564_vm2, %v1277_v38, %v1395_v0 }
0x10af   : > { %v1398_v4 = vpack.c.bf16 %v1397_v2, %v1397_v2 }
0x10b1   : > { %2132 = vmatmul.mubr.msk.bf16.vlgmr.msra.gmra.mrb[28].mxu0 %vm516_vm1, %v1398_v4  ;;  %v2246_v4 = vld [vmem:[%s2817_s13] sm:$0xff]  }
0x10b2   : > { %2159 = vmatprep.mubr.msk.bf16.mxu0 %vm2341_vm0, %v2340_v1 }
0x1184   : > { %v1461_v6 = vpop.f32.mrb[28].mxu0 }
0x1185   : > { %v1462_v7 = vadd.f32 %v1917_v5, %v1461_v6  ;;  %v2133_v8 = vpop.f32.mrb[29].mxu0  ;;  %v2247_v5 = vld [vmem:[%s2817_s13 + $0x8] sm:$0xff]  }
0x1186   : > { %v1464_v10 = vpop.f32.mrb[30].mxu0 }
0x1187   : > { %v2134_v11 = vpop.f32.mrb[31].mxu0  ;;  %v1467_v12 = vadd.f32 %v1462_v7, %v2626_v9  ;;  %v2238_v9 = vld [vmem:[%s2813_s9 + $0x40] sm:$0xff]  }
0x1188   : > { %2144 = vmatpush3.bf16.msra.mxu0 %v2238_v9  ;;  %v1962_v11 = vld [vmem:[%s2815_s11 + $0x1] ss:$0 sm:$0xff] }
0x1189   : > { %v1472_v3 = vsel %vm516_vm1, %v1467_v12, 0.0  ;;  %2145 = vmatprep.subr.bf16.mxu0 %v2340_v1 }
0x118a   : > { %1473 = vadd.xlane.f32.xlu1 %v1472_v3  ;;  %v1963_v3 = vld [vmem:[%s2816_s12 + $0x1] ss:$0 sm:$0xff] }
0x118c   : > { %2146 = vmatpush3.bf16.msra.mxu0 %v2239_v30 }
0x118d   : > { %2147 = vmatprep.subr.bf16.mxu0 %v2340_v1 }
0x1190   : > { %2148 = vmatpush3.bf16.msra.mxu0 %v2240_v31 }
0x1191   : > { %2149 = vmatprep.subr.bf16.mxu0 %v2340_v1 }
0x1194   : > { %2150 = vmatpush3.bf16.msra.mxu0 %v2241_v32 }
0x1195   : > { %2151 = vmatprep.subr.bf16.mxu0 %v2340_v1 }
0x1198   : > { %2152 = vmatpush3.bf16.msra.mxu0 %v2242_v33 }
0x1199   : > { %2153 = vmatprep.subr.bf16.mxu0 %v2340_v1 }
0x119c   : > { %2154 = vmatpush3.bf16.msra.mxu0 %v2243_v34 }
0x119d   : > { %2155 = vmatprep.subr.bf16.mxu0 %v2340_v1 }
0x11a0   : > { %2156 = vmatpush3.bf16.msra.mxu0 %v2244_v35 }
0x11a1   : > { %2157 = vmatprep.subr.bf16.mxu0 %v2340_v1 }
0x11a4   : > { %2158 = vmatpush3.bf16.msra.mxu0 %v2245_v36 }
0x1217   : > { %v1474_v13 = vpop.xlane.xlu1 %1473 }
0x1218   : > { %v1475_v14 = vmul.f32 0.03125, %v1474_v13 }
0x121a   : > { %v1476_v15 = vsub.f32 %v1467_v12, %v1475_v14 }
0x121c   : > { %v1477_v16 = vmul.f32 %v1476_v15, %v1476_v15 }
0x121e   : > { %v1478_v17 = vsel %vm516_vm1, %v1477_v16, 0.0 }
0x121f   : > { %1479 = vadd.xlane.f32.xlu0 %v1478_v17 }
0x12ac   : > { %v1480_v20 = vpop.xlane.xlu0 %1479 }
0x12ad   : > { %v1481_v21 = vmul.f32 0.03125, %v1480_v20 }
0x12af   : > { %v1482_v22 = vadd.f32 1e-05, %v1481_v21 }
0x12b1   : > { %2270 = vrsqrt.f32 %v1482_v22 }
0x12bb   : > { %v2271_v23 = vpop.eup %2270 }
0x12bc   : > { %v1484_v25 = vmul.f32 %v2271_v23, %v1476_v15 }
0x12be   : > { %v1491_v27 = vmul.f32 %v1923_v24, %v1484_v25 }
0x12c0   : > { %v1498_v28 = vadd.f32 %v1924_v26, %v1491_v27 }
0x12c2   : > { %v1499_v29 = vpack.c.bf16 %v1498_v28, %v1498_v28 }
0x12c4   : > { %2140 = vmatmul.mubr.msk.bf16.vlgmr.msra.gmra.mrb[24].mxu1 %vm516_vm1, %v1499_v29 }
0x12c5   : > { %2167 = vmatprep.mubr.msk.bf16.mxu1 %vm2341_vm0, %v2340_v1  ;;  %2164 = vmatpush3.bf16.msra.mxu1 %v2246_v4 }
0x12c6   : > { %2165 = vmatprep.subr.bf16.mxu1 %v2340_v1  ;;  %v1964_v1 = vld [vmem:[%s2818_s14] ss:$0 sm:$0xff] }
0x12c9   : > { %2166 = vmatpush3.bf16.msra.mxu1 %v2247_v5 }
0x1397   : > { %v1562_v38 = vpop.f32.mrb[24].mxu1 }
0x1398   : > { %v1563_v39 = vadd.f32 %v1930_v37, %v1562_v38  ;;  %v2141_v40 = vpop.f32.mrb[25].mxu1 }
0x1399   : > { %v1565_v41 = vpop.f32.mrb[26].mxu1 }
0x139a   : > { %v1569_v42 = vmul.f32 0.044715, %v1563_v39  ;;  %v2142_v43 = vpop.f32.mrb[27].mxu1  ;;  %v1568_v49 = vmul.f32 0.5, %v1563_v39 }
0x139c   : > { %v1570_v44 = vmul.f32 %v1569_v42, %v1563_v39 }
0x139e   : > { %v1571_v45 = vmul.f32 %v1570_v44, %v1563_v39 }
0x13a0   : > { %v1572_v46 = vadd.f32 %v1571_v45, %v1563_v39 }
0x13a2   : > { %v1573_v47 = vmul.f32 0.7978846, %v1572_v46 }
0x13a4   : > { %2272 = vtanh.f32 %v1573_v47 }
0x13ae   : > { %v2273_v48 = vpop.eup %2272 }
0x13af   : > { %v1575_v50 = vadd.f32 1.0, %v2273_v48 }
0x13b1   : > { %v1576_v51 = vmul.f32 %v1575_v50, %v1568_v49 }
0x13b3   : > { %v1577_v52 = vpack.c.bf16 %v1576_v51, %v1576_v51 }
0x13b5   : > { %2160 = vmatmul.mubr.bf16.vlgmr.msra.gmra.mrb[32].mxu0 %v1577_v52 }
0x1488   : > { %v1685_v54 = vpop.f32.mrb[32].mxu0 }
0x1489   : > { %v1686_v55 = vadd.f32 %v1951_v53, %v1685_v54  ;;  %v2161_v56 = vpop.f32.mrb[33].mxu0 }
0x148a   : > { %v1688_v57 = vpop.f32.mrb[34].mxu0 }
0x148b   : > { %v2162_v58 = vpop.f32.mrb[35].mxu0  ;;  %v1691_v59 = vadd.f32 %v1686_v55, %v1498_v28 }
0x148d   : > { %v1696_v60 = vsel %vm516_vm1, %v1691_v59, 0.0 }
0x148e   : > { %1697 = vadd.xlane.f32.xlu1 %v1696_v60 }
0x151b   : > { %v1698_v61 = vpop.xlane.xlu1 %1697 }
0x151c   : > { %v1699_v62 = vmul.f32 0.03125, %v1698_v61 }
0x151e   : > { %v1700_v63 = vsub.f32 %v1691_v59, %v1699_v62 }
0x1520   : > { %v1701_v0 = vmul.f32 %v1700_v63, %v1700_v63 }
0x1522   : > { %v1702_v2 = vsel %vm516_vm1, %v1701_v0, 0.0 }
0x1523   : > { %1703 = vadd.xlane.f32.xlu0 %v1702_v2 }
0x15b0   : > { %v1704_v6 = vpop.xlane.xlu0 %1703 }
0x15b1   : > { %v1705_v7 = vmul.f32 0.03125, %v1704_v6 }
0x15b3   : > { %v1706_v8 = vadd.f32 1e-05, %v1705_v7 }
0x15b5   : > { %2274 = vrsqrt.f32 %v1706_v8 }
0x15bf   : > { %v2275_v10 = vpop.eup %2274 }
0x15c0   : > { %v1708_v12 = vmul.f32 %v2275_v10, %v1700_v63 }
0x15c2   : > { %v1715_v13 = vmul.f32 %v1962_v11, %v1708_v12 }
0x15c4   : > { %v1722_v14 = vadd.f32 %v1963_v3, %v1715_v13 }
0x15c6   : > { %v1723_v15 = vpack.c.bf16 %v1722_v14, %v1722_v14 }
0x15c8   : > { %2168 = vmatmul.mubr.msk.bf16.vlgmr.msra.gmra.mrb[28].mxu1 %vm516_vm1, %v1723_v15 }
0x169b   : > { %v1784_v16 = vpop.f32.mrb[28].mxu1 }
0x169c   : > { %v1785_v17 = vadd.f32 %v1964_v1, %v1784_v16  ;;  %v2169_v18 = vpop.f32.mrb[29].mxu1 }
0x169d   : > { %v1787_v19 = vpop.f32.mrb[30].mxu1 }
0x169e   : > { %1790 = vst [vmem:[%s485_s25] sm:$0xff] %v1785_v17  ;;  %v2170_v9 = vpop.f32.mrb[31].mxu1 }
0x169f   : > { %2289 = shalt.err (!%p2286_p3)
}
0x16a0   : > { %s2290_s1 = scalar_lea.hbm %s2762_s2, 128  ;;  %s2294_s23 = scalar_lea.hbm %s2819_s15, 256 }
0x16a1   : > { %p2291_p4 = scmp.ne.s32.totalorder %s2762_s2, %s2290_s1  ;;  %p2295_p9 = scmp.lt.u32.totalorder %s2762_s2, %s2819_s15 }
0x16a2   : > { %p2296_p10 = scmp.lt.u32.totalorder %s2294_s23, %s2290_s1  ;;  %p2298_p12 = scmp.lt.u32.totalorder %s2290_s1, %s2762_s2 }
0x16a3   : > { %p2292_p7 = pnand %p2291_p4, %p2467_p5 }
0x16a4   : > { %p2297_p11 = por %p2296_p10, %p2295_p9 }
0x16a5   : > { %p2293_p8 = pneg %p2292_p7 }
0x16a6   : > { %p2299_p13 = por %p2298_p12, %p2297_p11 }
0x16a8   : > { %p2300_p0 = pnand %p2299_p13, %p2293_p8 }
0x16aa   : > { %2303 = shalt.err (!%p2300_p0)
}
0x16ab   : > { %2171 = dma.vmem_to_hbm [thread:$0]  (%p2467_p5), %s2764_s26, 128, %s2762_s2, %s1792_s27  }
0x16ac PF: > { %p2177_p1 = scmp.ge.s32.totalorder %s2338_s21, 2  ;;  %s1817_s22 = sand.u32 1, %s2326_s18  }
0x16ad   : > { %s1818_s17 = scalar_lea.sflag [#allocation3], %s1817_s22 }
0x16ae   : > { %p2174_p2 = pnand %p2177_p1, %p2471_p6 }
0x16b0   : > { %2321 = dma.done.wait (!%p2174_p2), %s1818_s17, 128  }
0x16b1   : > { %2323 = vsyncadd (!%p2174_p2), %s1818_s17, 4294967168  ;;  %s2841_s1 = sld [smem:[#allocation5_spill]]  ;;  %p25_p3 = scmp.ge.s32.totalorder %s2454_s24, 4  }
0x16b2   : > { %s2842_s18 = smov %s2330_s19  ;;  %s2843_s19 = smov %s2334_s20 }
0x16b3   : > { %s2845_s21 = smov %s2454_s24  ;;  %27 = sbr.rel (!%p25_p3) target bundleno = 7 (0x7), region = 127 }
0x16b7   : > { %s2844_s20 = smov %s2841_s1 }
0x16ba   :  { %1823 = vsyncpa [#allocation3], 1 }
0x16bb   :  { %1825 = vsyncpa [#allocation3 + $0x1], 1 }

</bundles_post_ra>
